<compile_context>
chip_gen: v6e
topology: v6e:2x2x1
jax: 0.10.0
libtpu: 0.0.40
codegen_flags: <defaults>
</compile_context>

<pallas_src>
import jax
import jax.numpy as jnp
import numpy as np
from jax.experimental import pallas as pl


def _gru_agent_kernel(x_ref, h0_ref, w1_ref, wgru_ref, w2_ref, b_ref,
                      q_ref, hout_ref):
    """Whole forward pass in one gridless kernel invocation.

    x_ref   : (T*bs, F)  bf16, TIME-MAJOR rows (row = t*bs + b)
    h0_ref  : (bs, H)    f32   initial hidden state
    w1_ref  : (F, H)     bf16  fc1 weight (stored transposed vs. PyTorch)
    wgru_ref: (6, H, H)  bf16  [wih_r, wih_z, wih_n, whh_r, whh_z, whh_n]
    w2_ref  : (H, A)     bf16  fc2 weight
    b_ref   : (8, H)     f32   [b1, bih_r, bih_z, bih_n, bhh_r, bhh_z, bhh_n, b2(padded)]
    q_ref   : (T*bs, A)  f32   time-major q-values
    hout_ref: (bs, H)    f32   final hidden state
    """
    TB, _ = x_ref.shape
    bs, H = h0_ref.shape
    T = TB // bs
    A = q_ref.shape[-1]

    # ---- packed biases: static row slices at lane offset 0 (broadcast over rows) ----
    b1 = b_ref[0:1, :]
    bih_r = b_ref[1:2, :]
    bih_z = b_ref[2:3, :]
    bih_n = b_ref[3:4, :]
    bhh_r = b_ref[4:5, :]
    bhh_z = b_ref[5:6, :]
    bhh_n = b_ref[6:7, :]
    b2 = b_ref[7:8, :A]

    # ---- pre-split GRU weights: leading-axis indexing, each (H, H) at lane 0 ----
    wih_r = wgru_ref[0]
    wih_z = wgru_ref[1]
    wih_n = wgru_ref[2]
    whh_r = wgru_ref[3]
    whh_z = wgru_ref[4]
    whh_n = wgru_ref[5]

    # ---- fc1 + ReLU over all T*bs rows: one bf16 MXU pass, f32 accumulate ----
    xh = jnp.maximum(
        jnp.dot(x_ref[...], w1_ref[...], preferred_element_type=jnp.float32)
        + b1, 0.0)
    xh_b = xh.astype(jnp.bfloat16)

    # ---- time-independent input-gate projections, per-gate (no lane rotates) ----
    gx_r = jnp.dot(xh_b, wih_r, preferred_element_type=jnp.float32) + bih_r
    gx_z = jnp.dot(xh_b, wih_z, preferred_element_type=jnp.float32) + bih_z
    gx_n = jnp.dot(xh_b, wih_n, preferred_element_type=jnp.float32) + bih_n

    # ---- serial GRU recurrence, unrolled at trace time (T is static & tiny).
    #      h carried as an f32 value; per-step dots are single-pass bf16. ----
    # TODO(synk): for T >~ 32 switch to lax.fori_loop + VMEM scratch for hs.
    h = h0_ref[...]
    hs = []
    for t in range(T):
        lo = t * bs
        h_b = h.astype(jnp.bfloat16)
        gh_r = jnp.dot(h_b, whh_r, preferred_element_type=jnp.float32) + bhh_r
        gh_z = jnp.dot(h_b, whh_z, preferred_element_type=jnp.float32) + bhh_z
        gh_n = jnp.dot(h_b, whh_n, preferred_element_type=jnp.float32) + bhh_n
        r = jax.nn.sigmoid(gx_r[lo:lo + bs, :] + gh_r)
        z = jax.nn.sigmoid(gx_z[lo:lo + bs, :] + gh_z)
        n = jnp.tanh(gx_n[lo:lo + bs, :] + r * gh_n)
        h = (1.0 - z) * n + z * h
        hs.append(h)

    hout_ref[...] = h

    # ---- fc2 over all timesteps at once: axis-0 concat (sublane append),
    #      one matmul, one plain 2D output store ----
    hs_all = jnp.concatenate(hs, axis=0).astype(jnp.bfloat16)   # (T*bs, H), time-major
    q_ref[...] = (jnp.dot(hs_all, w2_ref[...],
                          preferred_element_type=jnp.float32) + b2)


def pack_params(params):
    """One-time repack of PyTorch-layout params into kernel operands.

    Pre-splits the GRU gate matrices, packs all biases into a single (8, H)
    buffer, and casts the MXU weight operands to bf16 (halves DMA bytes and
    makes every dot a single MXU pass).
    """
    H = params["w1"].shape[1]
    A = params["w2"].shape[1]
    assert A <= H, "bias packing assumes n_actions <= rnn_hidden_dim"
    wih = params["wih"]   # (H, 3H), gates [r | z | n]
    whh = params["whh"]   # (H, 3H)
    w_gru = jnp.stack(
        [wih[:, 0:H], wih[:, H:2 * H], wih[:, 2 * H:3 * H],
         whh[:, 0:H], whh[:, H:2 * H], whh[:, 2 * H:3 * H]], axis=0)
    b2p = jnp.zeros((H,), jnp.float32).at[:A].set(params["b2"][0])
    biases = jnp.stack(
        [params["b1"][0],
         params["bih"][0, 0:H], params["bih"][0, H:2 * H], params["bih"][0, 2 * H:3 * H],
         params["bhh"][0, 0:H], params["bhh"][0, H:2 * H], params["bhh"][0, 2 * H:3 * H],
         b2p], axis=0)
    return {
        "w1": params["w1"].astype(jnp.bfloat16),       # (F, H)
        "w_gru": w_gru.astype(jnp.bfloat16),           # (6, H, H)
        "w2": params["w2"].astype(jnp.bfloat16),       # (H, A)
        "biases": biases.astype(jnp.float32),          # (8, H)
    }


@jax.jit
def rnn_fast_agent_forward(inputs, hidden_state, packed):
    """inputs: (bs, T, F) f32, hidden_state: (bs, H) f32. Returns (q, h)."""
    bs, T, F = inputs.shape
    H = hidden_state.shape[-1]
    A = packed["w2"].shape[1]

    # Time-major flatten + bf16 cast OUTSIDE the kernel (tiny contiguous data).
    x_tm = jnp.transpose(inputs, (1, 0, 2)).reshape(T * bs, F).astype(jnp.bfloat16)

    q_tm, h = pl.pallas_call(
        _gru_agent_kernel,
        out_shape=(
            jax.ShapeDtypeStruct((T * bs, A), jnp.float32),
            jax.ShapeDtypeStruct((bs, H), jnp.float32),
        ),
    )(x_tm, hidden_state,
      packed["w1"], packed["w_gru"], packed["w2"], packed["biases"])

    # Batch-major fixup of the tiny (T*bs, A) result in the wrapper.
    q = jnp.transpose(q_tm.reshape(T, bs, A), (1, 0, 2))
    # PyTorch GRU returns h of shape (num_layers=1, bs, H).
    return q, h.reshape(1, bs, H)


def init_params(key, input_shape, hidden_dim, n_actions):
    """Deterministic synthetic parameters (PyTorch-like uniform init)."""
    ks = jax.random.split(key, 10)
    u = lambda k, shape, bound: jax.random.uniform(
        k, shape, jnp.float32, minval=-bound, maxval=bound)
    b1v = 1.0 / np.sqrt(input_shape)
    bh = 1.0 / np.sqrt(hidden_dim)
    return {
        # fc1: Linear(input_shape, H) -> stored as (F, H), bias (1, H)
        "w1": u(ks[0], (input_shape, hidden_dim), b1v),
        "b1": u(ks[1], (1, hidden_dim), b1v),
        # GRU weights, transposed from PyTorch (3H, H) -> (H, 3H), gates [r|z|n]
        "wih": u(ks[2], (hidden_dim, 3 * hidden_dim), bh),
        "bih": u(ks[3], (1, 3 * hidden_dim), bh),
        "whh": u(ks[4], (hidden_dim, 3 * hidden_dim), bh),
        "bhh": u(ks[5], (1, 3 * hidden_dim), bh),
        # fc2: Linear(H, n_actions) -> (H, A), bias (1, A)
        "w2": u(ks[6], (hidden_dim, n_actions), bh),
        "b2": u(ks[7], (1, n_actions), bh),
    }


def reference_forward(inputs, hidden_state, params):
    """Pure-JAX f32 reference matching PyTorch semantics exactly."""
    H = params["w1"].shape[1]
    x = jnp.maximum(jnp.einsum("btf,fh->bth", inputs, params["w1"])
                    + params["b1"], 0.0)
    gx_all = jnp.einsum("bth,hg->btg", x, params["wih"]) + params["bih"]

    def step(h, gx):
        gh = h @ params["whh"] + params["bhh"]
        r = jax.nn.sigmoid(gx[:, :H] + gh[:, :H])
        z = jax.nn.sigmoid(gx[:, H:2 * H] + gh[:, H:2 * H])
        n = jnp.tanh(gx[:, 2 * H:] + r * gh[:, 2 * H:])
        h_new = (1.0 - z) * n + z * h
        return h_new, h_new

    h_final, hs = jax.lax.scan(step, hidden_state,
                               jnp.swapaxes(gx_all, 0, 1))
    hs = jnp.swapaxes(hs, 0, 1)                      # (bs, T, H)
    q = jnp.einsum("bth,ha->bta", hs, params["w2"]) + params["b2"]
    return q, h_final.reshape(1, *hidden_state.shape)


if __name__ == "__main__":
    # Small shapes consistent with the module's forward:
    # inputs (bs, epi_len, num_feat), hidden (bs, rnn_hidden_dim).
    bs, epi_len, num_feat = 2, 8, 24
    hidden_dim, n_actions = 32, 8

    key = jax.random.PRNGKey(0)
    k_x, k_h, k_p = jax.random.split(key, 3)

    inputs = jax.random.normal(k_x, (bs, epi_len, num_feat), jnp.float32)
    # init_hidden() in the module is zeros; use zeros here too.
    hidden0 = jnp.zeros((bs, hidden_dim), jnp.float32)
    params = init_params(k_p, num_feat, hidden_dim, n_actions)
    packed = pack_params(params)    # one-time repack (amortized across calls)

    q, h = rnn_fast_agent_forward(inputs, hidden0, packed)
    q, h = jax.block_until_ready((q, h))

    q_ref, h_ref = reference_forward(inputs, hidden0, params)
    # Tolerance loosened vs. the pure-f32 version because MXU operands are
    # bf16 (f32 accumulate; gate math stays f32).
    np.testing.assert_allclose(np.asarray(q), np.asarray(q_ref),
                               rtol=2e-2, atol=2e-2)
    np.testing.assert_allclose(np.asarray(h), np.asarray(h_ref),
                               rtol=2e-2, atol=2e-2)

    assert q.shape == (bs, epi_len, n_actions)
    assert h.shape == (1, bs, hidden_dim)
    print("KERNEL_OK")
</pallas_src>

<mosaic_0001>
module attributes {stable_mosaic.version = 11 : i64} {
  func.func @_gru_agent_kernel(%arg0: memref<16x24xbf16, #tpu.memory_space<vmem>>, %arg1: memref<2x32xf32, #tpu.memory_space<vmem>>, %arg2: memref<24x32xbf16, #tpu.memory_space<vmem>>, %arg3: memref<6x32x32xbf16, #tpu.memory_space<vmem>>, %arg4: memref<32x8xbf16, #tpu.memory_space<vmem>>, %arg5: memref<8x32xf32, #tpu.memory_space<vmem>>, %arg6: memref<16x8xf32, #tpu.memory_space<vmem>>, %arg7: memref<2x32xf32, #tpu.memory_space<vmem>>) attributes {dimension_semantics = [], scalar_prefetch = 0 : i64, scratch_operands = 0 : i64, tpu.core_type = #tpu.core_type<tc>} {
    %c0 = arith.constant 0 : index
    %c0_0 = arith.constant 0 : index
    %0 = vector.load %arg5[%c0, %c0_0] : memref<8x32xf32, #tpu.memory_space<vmem>>, vector<1x32xf32>
    %c1 = arith.constant 1 : index
    %c0_1 = arith.constant 0 : index
    %1 = vector.load %arg5[%c1, %c0_1] : memref<8x32xf32, #tpu.memory_space<vmem>>, vector<1x32xf32>
    %c2 = arith.constant 2 : index
    %c0_2 = arith.constant 0 : index
    %2 = vector.load %arg5[%c2, %c0_2] : memref<8x32xf32, #tpu.memory_space<vmem>>, vector<1x32xf32>
    %c3 = arith.constant 3 : index
    %c0_3 = arith.constant 0 : index
    %3 = vector.load %arg5[%c3, %c0_3] : memref<8x32xf32, #tpu.memory_space<vmem>>, vector<1x32xf32>
    %c4 = arith.constant 4 : index
    %c0_4 = arith.constant 0 : index
    %4 = vector.load %arg5[%c4, %c0_4] : memref<8x32xf32, #tpu.memory_space<vmem>>, vector<1x32xf32>
    %c5 = arith.constant 5 : index
    %c0_5 = arith.constant 0 : index
    %5 = vector.load %arg5[%c5, %c0_5] : memref<8x32xf32, #tpu.memory_space<vmem>>, vector<1x32xf32>
    %c6 = arith.constant 6 : index
    %c0_6 = arith.constant 0 : index
    %6 = vector.load %arg5[%c6, %c0_6] : memref<8x32xf32, #tpu.memory_space<vmem>>, vector<1x32xf32>
    %c7 = arith.constant 7 : index
    %c0_7 = arith.constant 0 : index
    %7 = vector.load %arg5[%c7, %c0_7] : memref<8x32xf32, #tpu.memory_space<vmem>>, vector<1x8xf32>
    %c0_8 = arith.constant 0 : index
    %c0_9 = arith.constant 0 : index
    %c0_10 = arith.constant 0 : index
    %8 = vector.load %arg3[%c0_8, %c0_9, %c0_10] : memref<6x32x32xbf16, #tpu.memory_space<vmem>>, vector<1x32x32xbf16>
    %9 = vector.shape_cast %8 : vector<1x32x32xbf16> to vector<32x32xbf16>
    %c1_11 = arith.constant 1 : index
    %c0_12 = arith.constant 0 : index
    %c0_13 = arith.constant 0 : index
    %10 = vector.load %arg3[%c1_11, %c0_12, %c0_13] : memref<6x32x32xbf16, #tpu.memory_space<vmem>>, vector<1x32x32xbf16>
    %11 = vector.shape_cast %10 : vector<1x32x32xbf16> to vector<32x32xbf16>
    %c2_14 = arith.constant 2 : index
    %c0_15 = arith.constant 0 : index
    %c0_16 = arith.constant 0 : index
    %12 = vector.load %arg3[%c2_14, %c0_15, %c0_16] : memref<6x32x32xbf16, #tpu.memory_space<vmem>>, vector<1x32x32xbf16>
    %13 = vector.shape_cast %12 : vector<1x32x32xbf16> to vector<32x32xbf16>
    %c3_17 = arith.constant 3 : index
    %c0_18 = arith.constant 0 : index
    %c0_19 = arith.constant 0 : index
    %14 = vector.load %arg3[%c3_17, %c0_18, %c0_19] : memref<6x32x32xbf16, #tpu.memory_space<vmem>>, vector<1x32x32xbf16>
    %15 = vector.shape_cast %14 : vector<1x32x32xbf16> to vector<32x32xbf16>
    %c4_20 = arith.constant 4 : index
    %c0_21 = arith.constant 0 : index
    %c0_22 = arith.constant 0 : index
    %16 = vector.load %arg3[%c4_20, %c0_21, %c0_22] : memref<6x32x32xbf16, #tpu.memory_space<vmem>>, vector<1x32x32xbf16>
    %17 = vector.shape_cast %16 : vector<1x32x32xbf16> to vector<32x32xbf16>
    %c5_23 = arith.constant 5 : index
    %c0_24 = arith.constant 0 : index
    %c0_25 = arith.constant 0 : index
    %18 = vector.load %arg3[%c5_23, %c0_24, %c0_25] : memref<6x32x32xbf16, #tpu.memory_space<vmem>>, vector<1x32x32xbf16>
    %19 = vector.shape_cast %18 : vector<1x32x32xbf16> to vector<32x32xbf16>
    %c0_26 = arith.constant 0 : index
    %c0_27 = arith.constant 0 : index
    %20 = vector.load %arg0[%c0_26, %c0_27] : memref<16x24xbf16, #tpu.memory_space<vmem>>, vector<16x24xbf16>
    %c0_28 = arith.constant 0 : index
    %c0_29 = arith.constant 0 : index
    %21 = vector.load %arg2[%c0_28, %c0_29] : memref<24x32xbf16, #tpu.memory_space<vmem>>, vector<24x32xbf16>
    %cst = arith.constant dense<0.000000e+00> : vector<16x32xf32>
    %22 = tpu.matmul %20, %21, %cst {dimension_numbers = #tpu.dot_dimension_numbers<[1], [0], [0], [1], [0, 0, 1, 1], [], []>} : vector<16x24xbf16>, vector<24x32xbf16>, vector<16x32xf32> -> vector<16x32xf32>
    %23 = vector.broadcast %0 : vector<1x32xf32> to vector<16x32xf32>
    %24 = arith.addf %22, %23 : vector<16x32xf32>
    %cst_30 = arith.constant 0.000000e+00 : f32
    %25 = vector.broadcast %cst_30 : f32 to vector<16x32xf32>
    %26 = arith.maximumf %24, %25 : vector<16x32xf32>
    %27 = arith.truncf %26 : vector<16x32xf32> to vector<16x32xbf16>
    %cst_31 = arith.constant dense<0.000000e+00> : vector<16x32xf32>
    %28 = tpu.matmul %27, %9, %cst_31 {dimension_numbers = #tpu.dot_dimension_numbers<[1], [0], [0], [1], [0, 0, 1, 1], [], []>} : vector<16x32xbf16>, vector<32x32xbf16>, vector<16x32xf32> -> vector<16x32xf32>
    %29 = vector.broadcast %1 : vector<1x32xf32> to vector<16x32xf32>
    %30 = arith.addf %28, %29 : vector<16x32xf32>
    %cst_32 = arith.constant dense<0.000000e+00> : vector<16x32xf32>
    %31 = tpu.matmul %27, %11, %cst_32 {dimension_numbers = #tpu.dot_dimension_numbers<[1], [0], [0], [1], [0, 0, 1, 1], [], []>} : vector<16x32xbf16>, vector<32x32xbf16>, vector<16x32xf32> -> vector<16x32xf32>
    %32 = vector.broadcast %2 : vector<1x32xf32> to vector<16x32xf32>
    %33 = arith.addf %31, %32 : vector<16x32xf32>
    %cst_33 = arith.constant dense<0.000000e+00> : vector<16x32xf32>
    %34 = tpu.matmul %27, %13, %cst_33 {dimension_numbers = #tpu.dot_dimension_numbers<[1], [0], [0], [1], [0, 0, 1, 1], [], []>} : vector<16x32xbf16>, vector<32x32xbf16>, vector<16x32xf32> -> vector<16x32xf32>
    %35 = vector.broadcast %3 : vector<1x32xf32> to vector<16x32xf32>
    %36 = arith.addf %34, %35 : vector<16x32xf32>
    %c0_34 = arith.constant 0 : index
    %c0_35 = arith.constant 0 : index
    %37 = vector.load %arg1[%c0_34, %c0_35] : memref<2x32xf32, #tpu.memory_space<vmem>>, vector<2x32xf32>
    %38 = arith.truncf %37 : vector<2x32xf32> to vector<2x32xbf16>
    %cst_36 = arith.constant dense<0.000000e+00> : vector<2x32xf32>
    %39 = tpu.matmul %38, %15, %cst_36 {dimension_numbers = #tpu.dot_dimension_numbers<[1], [0], [0], [1], [0, 0, 1, 1], [], []>} : vector<2x32xbf16>, vector<32x32xbf16>, vector<2x32xf32> -> vector<2x32xf32>
    %40 = vector.broadcast %4 : vector<1x32xf32> to vector<2x32xf32>
    %41 = arith.addf %39, %40 : vector<2x32xf32>
    %cst_37 = arith.constant dense<0.000000e+00> : vector<2x32xf32>
    %42 = tpu.matmul %38, %17, %cst_37 {dimension_numbers = #tpu.dot_dimension_numbers<[1], [0], [0], [1], [0, 0, 1, 1], [], []>} : vector<2x32xbf16>, vector<32x32xbf16>, vector<2x32xf32> -> vector<2x32xf32>
    %43 = vector.broadcast %5 : vector<1x32xf32> to vector<2x32xf32>
    %44 = arith.addf %42, %43 : vector<2x32xf32>
    %cst_38 = arith.constant dense<0.000000e+00> : vector<2x32xf32>
    %45 = tpu.matmul %38, %19, %cst_38 {dimension_numbers = #tpu.dot_dimension_numbers<[1], [0], [0], [1], [0, 0, 1, 1], [], []>} : vector<2x32xbf16>, vector<32x32xbf16>, vector<2x32xf32> -> vector<2x32xf32>
    %46 = vector.broadcast %6 : vector<1x32xf32> to vector<2x32xf32>
    %47 = arith.addf %45, %46 : vector<2x32xf32>
    %48 = vector.extract_strided_slice %30 {offsets = [0, 0], sizes = [2, 32], strides = [1, 1]} : vector<16x32xf32> to vector<2x32xf32>
    %49 = arith.addf %48, %41 : vector<2x32xf32>
    %50 = arith.negf %49 : vector<2x32xf32>
    %51 = math.exp %50 : vector<2x32xf32>
    %cst_39 = arith.constant 1.000000e+00 : f32
    %52 = vector.broadcast %cst_39 : f32 to vector<2x32xf32>
    %53 = arith.addf %52, %51 : vector<2x32xf32>
    %54 = arith.divf %52, %53 : vector<2x32xf32>
    %55 = vector.extract_strided_slice %33 {offsets = [0, 0], sizes = [2, 32], strides = [1, 1]} : vector<16x32xf32> to vector<2x32xf32>
    %56 = arith.addf %55, %44 : vector<2x32xf32>
    %57 = arith.negf %56 : vector<2x32xf32>
    %58 = math.exp %57 : vector<2x32xf32>
    %cst_40 = arith.constant 1.000000e+00 : f32
    %59 = vector.broadcast %cst_40 : f32 to vector<2x32xf32>
    %60 = arith.addf %59, %58 : vector<2x32xf32>
    %61 = arith.divf %59, %60 : vector<2x32xf32>
    %62 = vector.extract_strided_slice %36 {offsets = [0, 0], sizes = [2, 32], strides = [1, 1]} : vector<16x32xf32> to vector<2x32xf32>
    %63 = arith.mulf %54, %47 : vector<2x32xf32>
    %64 = arith.addf %62, %63 : vector<2x32xf32>
    %65 = math.tanh %64 : vector<2x32xf32>
    %cst_41 = arith.constant 1.000000e+00 : f32
    %66 = vector.broadcast %cst_41 : f32 to vector<2x32xf32>
    %67 = arith.subf %66, %61 : vector<2x32xf32>
    %68 = arith.mulf %67, %65 : vector<2x32xf32>
    %69 = arith.mulf %61, %37 : vector<2x32xf32>
    %70 = arith.addf %68, %69 : vector<2x32xf32>
    %71 = arith.truncf %70 : vector<2x32xf32> to vector<2x32xbf16>
    %cst_42 = arith.constant dense<0.000000e+00> : vector<2x32xf32>
    %72 = tpu.matmul %71, %15, %cst_42 {dimension_numbers = #tpu.dot_dimension_numbers<[1], [0], [0], [1], [0, 0, 1, 1], [], []>} : vector<2x32xbf16>, vector<32x32xbf16>, vector<2x32xf32> -> vector<2x32xf32>
    %73 = vector.broadcast %4 : vector<1x32xf32> to vector<2x32xf32>
    %74 = arith.addf %72, %73 : vector<2x32xf32>
    %cst_43 = arith.constant dense<0.000000e+00> : vector<2x32xf32>
    %75 = tpu.matmul %71, %17, %cst_43 {dimension_numbers = #tpu.dot_dimension_numbers<[1], [0], [0], [1], [0, 0, 1, 1], [], []>} : vector<2x32xbf16>, vector<32x32xbf16>, vector<2x32xf32> -> vector<2x32xf32>
    %76 = vector.broadcast %5 : vector<1x32xf32> to vector<2x32xf32>
    %77 = arith.addf %75, %76 : vector<2x32xf32>
    %cst_44 = arith.constant dense<0.000000e+00> : vector<2x32xf32>
    %78 = tpu.matmul %71, %19, %cst_44 {dimension_numbers = #tpu.dot_dimension_numbers<[1], [0], [0], [1], [0, 0, 1, 1], [], []>} : vector<2x32xbf16>, vector<32x32xbf16>, vector<2x32xf32> -> vector<2x32xf32>
    %79 = vector.broadcast %6 : vector<1x32xf32> to vector<2x32xf32>
    %80 = arith.addf %78, %79 : vector<2x32xf32>
    %81 = vector.extract_strided_slice %30 {offsets = [2, 0], sizes = [2, 32], strides = [1, 1]} : vector<16x32xf32> to vector<2x32xf32>
    %82 = arith.addf %81, %74 : vector<2x32xf32>
    %83 = arith.negf %82 : vector<2x32xf32>
    %84 = math.exp %83 : vector<2x32xf32>
    %cst_45 = arith.constant 1.000000e+00 : f32
    %85 = vector.broadcast %cst_45 : f32 to vector<2x32xf32>
    %86 = arith.addf %85, %84 : vector<2x32xf32>
    %87 = arith.divf %85, %86 : vector<2x32xf32>
    %88 = vector.extract_strided_slice %33 {offsets = [2, 0], sizes = [2, 32], strides = [1, 1]} : vector<16x32xf32> to vector<2x32xf32>
    %89 = arith.addf %88, %77 : vector<2x32xf32>
    %90 = arith.negf %89 : vector<2x32xf32>
    %91 = math.exp %90 : vector<2x32xf32>
    %cst_46 = arith.constant 1.000000e+00 : f32
    %92 = vector.broadcast %cst_46 : f32 to vector<2x32xf32>
    %93 = arith.addf %92, %91 : vector<2x32xf32>
    %94 = arith.divf %92, %93 : vector<2x32xf32>
    %95 = vector.extract_strided_slice %36 {offsets = [2, 0], sizes = [2, 32], strides = [1, 1]} : vector<16x32xf32> to vector<2x32xf32>
    %96 = arith.mulf %87, %80 : vector<2x32xf32>
    %97 = arith.addf %95, %96 : vector<2x32xf32>
    %98 = math.tanh %97 : vector<2x32xf32>
    %cst_47 = arith.constant 1.000000e+00 : f32
    %99 = vector.broadcast %cst_47 : f32 to vector<2x32xf32>
    %100 = arith.subf %99, %94 : vector<2x32xf32>
    %101 = arith.mulf %100, %98 : vector<2x32xf32>
    %102 = arith.mulf %94, %70 : vector<2x32xf32>
    %103 = arith.addf %101, %102 : vector<2x32xf32>
    %104 = arith.truncf %103 : vector<2x32xf32> to vector<2x32xbf16>
    %cst_48 = arith.constant dense<0.000000e+00> : vector<2x32xf32>
    %105 = tpu.matmul %104, %15, %cst_48 {dimension_numbers = #tpu.dot_dimension_numbers<[1], [0], [0], [1], [0, 0, 1, 1], [], []>} : vector<2x32xbf16>, vector<32x32xbf16>, vector<2x32xf32> -> vector<2x32xf32>
    %106 = vector.broadcast %4 : vector<1x32xf32> to vector<2x32xf32>
    %107 = arith.addf %105, %106 : vector<2x32xf32>
    %cst_49 = arith.constant dense<0.000000e+00> : vector<2x32xf32>
    %108 = tpu.matmul %104, %17, %cst_49 {dimension_numbers = #tpu.dot_dimension_numbers<[1], [0], [0], [1], [0, 0, 1, 1], [], []>} : vector<2x32xbf16>, vector<32x32xbf16>, vector<2x32xf32> -> vector<2x32xf32>
    %109 = vector.broadcast %5 : vector<1x32xf32> to vector<2x32xf32>
    %110 = arith.addf %108, %109 : vector<2x32xf32>
    %cst_50 = arith.constant dense<0.000000e+00> : vector<2x32xf32>
    %111 = tpu.matmul %104, %19, %cst_50 {dimension_numbers = #tpu.dot_dimension_numbers<[1], [0], [0], [1], [0, 0, 1, 1], [], []>} : vector<2x32xbf16>, vector<32x32xbf16>, vector<2x32xf32> -> vector<2x32xf32>
    %112 = vector.broadcast %6 : vector<1x32xf32> to vector<2x32xf32>
    %113 = arith.addf %111, %112 : vector<2x32xf32>
    %114 = vector.extract_strided_slice %30 {offsets = [4, 0], sizes = [2, 32], strides = [1, 1]} : vector<16x32xf32> to vector<2x32xf32>
    %115 = arith.addf %114, %107 : vector<2x32xf32>
    %116 = arith.negf %115 : vector<2x32xf32>
    %117 = math.exp %116 : vector<2x32xf32>
    %cst_51 = arith.constant 1.000000e+00 : f32
    %118 = vector.broadcast %cst_51 : f32 to vector<2x32xf32>
    %119 = arith.addf %118, %117 : vector<2x32xf32>
    %120 = arith.divf %118, %119 : vector<2x32xf32>
    %121 = vector.extract_strided_slice %33 {offsets = [4, 0], sizes = [2, 32], strides = [1, 1]} : vector<16x32xf32> to vector<2x32xf32>
    %122 = arith.addf %121, %110 : vector<2x32xf32>
    %123 = arith.negf %122 : vector<2x32xf32>
    %124 = math.exp %123 : vector<2x32xf32>
    %cst_52 = arith.constant 1.000000e+00 : f32
    %125 = vector.broadcast %cst_52 : f32 to vector<2x32xf32>
    %126 = arith.addf %125, %124 : vector<2x32xf32>
    %127 = arith.divf %125, %126 : vector<2x32xf32>
    %128 = vector.extract_strided_slice %36 {offsets = [4, 0], sizes = [2, 32], strides = [1, 1]} : vector<16x32xf32> to vector<2x32xf32>
    %129 = arith.mulf %120, %113 : vector<2x32xf32>
    %130 = arith.addf %128, %129 : vector<2x32xf32>
    %131 = math.tanh %130 : vector<2x32xf32>
    %cst_53 = arith.constant 1.000000e+00 : f32
    %132 = vector.broadcast %cst_53 : f32 to vector<2x32xf32>
    %133 = arith.subf %132, %127 : vector<2x32xf32>
    %134 = arith.mulf %133, %131 : vector<2x32xf32>
    %135 = arith.mulf %127, %103 : vector<2x32xf32>
    %136 = arith.addf %134, %135 : vector<2x32xf32>
    %137 = arith.truncf %136 : vector<2x32xf32> to vector<2x32xbf16>
    %cst_54 = arith.constant dense<0.000000e+00> : vector<2x32xf32>
    %138 = tpu.matmul %137, %15, %cst_54 {dimension_numbers = #tpu.dot_dimension_numbers<[1], [0], [0], [1], [0, 0, 1, 1], [], []>} : vector<2x32xbf16>, vector<32x32xbf16>, vector<2x32xf32> -> vector<2x32xf32>
    %139 = vector.broadcast %4 : vector<1x32xf32> to vector<2x32xf32>
    %140 = arith.addf %138, %139 : vector<2x32xf32>
    %cst_55 = arith.constant dense<0.000000e+00> : vector<2x32xf32>
    %141 = tpu.matmul %137, %17, %cst_55 {dimension_numbers = #tpu.dot_dimension_numbers<[1], [0], [0], [1], [0, 0, 1, 1], [], []>} : vector<2x32xbf16>, vector<32x32xbf16>, vector<2x32xf32> -> vector<2x32xf32>
    %142 = vector.broadcast %5 : vector<1x32xf32> to vector<2x32xf32>
    %143 = arith.addf %141, %142 : vector<2x32xf32>
    %cst_56 = arith.constant dense<0.000000e+00> : vector<2x32xf32>
    %144 = tpu.matmul %137, %19, %cst_56 {dimension_numbers = #tpu.dot_dimension_numbers<[1], [0], [0], [1], [0, 0, 1, 1], [], []>} : vector<2x32xbf16>, vector<32x32xbf16>, vector<2x32xf32> -> vector<2x32xf32>
    %145 = vector.broadcast %6 : vector<1x32xf32> to vector<2x32xf32>
    %146 = arith.addf %144, %145 : vector<2x32xf32>
    %147 = vector.extract_strided_slice %30 {offsets = [6, 0], sizes = [2, 32], strides = [1, 1]} : vector<16x32xf32> to vector<2x32xf32>
    %148 = arith.addf %147, %140 : vector<2x32xf32>
    %149 = arith.negf %148 : vector<2x32xf32>
    %150 = math.exp %149 : vector<2x32xf32>
    %cst_57 = arith.constant 1.000000e+00 : f32
    %151 = vector.broadcast %cst_57 : f32 to vector<2x32xf32>
    %152 = arith.addf %151, %150 : vector<2x32xf32>
    %153 = arith.divf %151, %152 : vector<2x32xf32>
    %154 = vector.extract_strided_slice %33 {offsets = [6, 0], sizes = [2, 32], strides = [1, 1]} : vector<16x32xf32> to vector<2x32xf32>
    %155 = arith.addf %154, %143 : vector<2x32xf32>
    %156 = arith.negf %155 : vector<2x32xf32>
    %157 = math.exp %156 : vector<2x32xf32>
    %cst_58 = arith.constant 1.000000e+00 : f32
    %158 = vector.broadcast %cst_58 : f32 to vector<2x32xf32>
    %159 = arith.addf %158, %157 : vector<2x32xf32>
    %160 = arith.divf %158, %159 : vector<2x32xf32>
    %161 = vector.extract_strided_slice %36 {offsets = [6, 0], sizes = [2, 32], strides = [1, 1]} : vector<16x32xf32> to vector<2x32xf32>
    %162 = arith.mulf %153, %146 : vector<2x32xf32>
    %163 = arith.addf %161, %162 : vector<2x32xf32>
    %164 = math.tanh %163 : vector<2x32xf32>
    %cst_59 = arith.constant 1.000000e+00 : f32
    %165 = vector.broadcast %cst_59 : f32 to vector<2x32xf32>
    %166 = arith.subf %165, %160 : vector<2x32xf32>
    %167 = arith.mulf %166, %164 : vector<2x32xf32>
    %168 = arith.mulf %160, %136 : vector<2x32xf32>
    %169 = arith.addf %167, %168 : vector<2x32xf32>
    %170 = arith.truncf %169 : vector<2x32xf32> to vector<2x32xbf16>
    %cst_60 = arith.constant dense<0.000000e+00> : vector<2x32xf32>
    %171 = tpu.matmul %170, %15, %cst_60 {dimension_numbers = #tpu.dot_dimension_numbers<[1], [0], [0], [1], [0, 0, 1, 1], [], []>} : vector<2x32xbf16>, vector<32x32xbf16>, vector<2x32xf32> -> vector<2x32xf32>
    %172 = vector.broadcast %4 : vector<1x32xf32> to vector<2x32xf32>
    %173 = arith.addf %171, %172 : vector<2x32xf32>
    %cst_61 = arith.constant dense<0.000000e+00> : vector<2x32xf32>
    %174 = tpu.matmul %170, %17, %cst_61 {dimension_numbers = #tpu.dot_dimension_numbers<[1], [0], [0], [1], [0, 0, 1, 1], [], []>} : vector<2x32xbf16>, vector<32x32xbf16>, vector<2x32xf32> -> vector<2x32xf32>
    %175 = vector.broadcast %5 : vector<1x32xf32> to vector<2x32xf32>
    %176 = arith.addf %174, %175 : vector<2x32xf32>
    %cst_62 = arith.constant dense<0.000000e+00> : vector<2x32xf32>
    %177 = tpu.matmul %170, %19, %cst_62 {dimension_numbers = #tpu.dot_dimension_numbers<[1], [0], [0], [1], [0, 0, 1, 1], [], []>} : vector<2x32xbf16>, vector<32x32xbf16>, vector<2x32xf32> -> vector<2x32xf32>
    %178 = vector.broadcast %6 : vector<1x32xf32> to vector<2x32xf32>
    %179 = arith.addf %177, %178 : vector<2x32xf32>
    %180 = vector.extract_strided_slice %30 {offsets = [8, 0], sizes = [2, 32], strides = [1, 1]} : vector<16x32xf32> to vector<2x32xf32>
    %181 = arith.addf %180, %173 : vector<2x32xf32>
    %182 = arith.negf %181 : vector<2x32xf32>
    %183 = math.exp %182 : vector<2x32xf32>
    %cst_63 = arith.constant 1.000000e+00 : f32
    %184 = vector.broadcast %cst_63 : f32 to vector<2x32xf32>
    %185 = arith.addf %184, %183 : vector<2x32xf32>
    %186 = arith.divf %184, %185 : vector<2x32xf32>
    %187 = vector.extract_strided_slice %33 {offsets = [8, 0], sizes = [2, 32], strides = [1, 1]} : vector<16x32xf32> to vector<2x32xf32>
    %188 = arith.addf %187, %176 : vector<2x32xf32>
    %189 = arith.negf %188 : vector<2x32xf32>
    %190 = math.exp %189 : vector<2x32xf32>
    %cst_64 = arith.constant 1.000000e+00 : f32
    %191 = vector.broadcast %cst_64 : f32 to vector<2x32xf32>
    %192 = arith.addf %191, %190 : vector<2x32xf32>
    %193 = arith.divf %191, %192 : vector<2x32xf32>
    %194 = vector.extract_strided_slice %36 {offsets = [8, 0], sizes = [2, 32], strides = [1, 1]} : vector<16x32xf32> to vector<2x32xf32>
    %195 = arith.mulf %186, %179 : vector<2x32xf32>
    %196 = arith.addf %194, %195 : vector<2x32xf32>
    %197 = math.tanh %196 : vector<2x32xf32>
    %cst_65 = arith.constant 1.000000e+00 : f32
    %198 = vector.broadcast %cst_65 : f32 to vector<2x32xf32>
    %199 = arith.subf %198, %193 : vector<2x32xf32>
    %200 = arith.mulf %199, %197 : vector<2x32xf32>
    %201 = arith.mulf %193, %169 : vector<2x32xf32>
    %202 = arith.addf %200, %201 : vector<2x32xf32>
    %203 = arith.truncf %202 : vector<2x32xf32> to vector<2x32xbf16>
    %cst_66 = arith.constant dense<0.000000e+00> : vector<2x32xf32>
    %204 = tpu.matmul %203, %15, %cst_66 {dimension_numbers = #tpu.dot_dimension_numbers<[1], [0], [0], [1], [0, 0, 1, 1], [], []>} : vector<2x32xbf16>, vector<32x32xbf16>, vector<2x32xf32> -> vector<2x32xf32>
    %205 = vector.broadcast %4 : vector<1x32xf32> to vector<2x32xf32>
    %206 = arith.addf %204, %205 : vector<2x32xf32>
    %cst_67 = arith.constant dense<0.000000e+00> : vector<2x32xf32>
    %207 = tpu.matmul %203, %17, %cst_67 {dimension_numbers = #tpu.dot_dimension_numbers<[1], [0], [0], [1], [0, 0, 1, 1], [], []>} : vector<2x32xbf16>, vector<32x32xbf16>, vector<2x32xf32> -> vector<2x32xf32>
    %208 = vector.broadcast %5 : vector<1x32xf32> to vector<2x32xf32>
    %209 = arith.addf %207, %208 : vector<2x32xf32>
    %cst_68 = arith.constant dense<0.000000e+00> : vector<2x32xf32>
    %210 = tpu.matmul %203, %19, %cst_68 {dimension_numbers = #tpu.dot_dimension_numbers<[1], [0], [0], [1], [0, 0, 1, 1], [], []>} : vector<2x32xbf16>, vector<32x32xbf16>, vector<2x32xf32> -> vector<2x32xf32>
    %211 = vector.broadcast %6 : vector<1x32xf32> to vector<2x32xf32>
    %212 = arith.addf %210, %211 : vector<2x32xf32>
    %213 = vector.extract_strided_slice %30 {offsets = [10, 0], sizes = [2, 32], strides = [1, 1]} : vector<16x32xf32> to vector<2x32xf32>
    %214 = arith.addf %213, %206 : vector<2x32xf32>
    %215 = arith.negf %214 : vector<2x32xf32>
    %216 = math.exp %215 : vector<2x32xf32>
    %cst_69 = arith.constant 1.000000e+00 : f32
    %217 = vector.broadcast %cst_69 : f32 to vector<2x32xf32>
    %218 = arith.addf %217, %216 : vector<2x32xf32>
    %219 = arith.divf %217, %218 : vector<2x32xf32>
    %220 = vector.extract_strided_slice %33 {offsets = [10, 0], sizes = [2, 32], strides = [1, 1]} : vector<16x32xf32> to vector<2x32xf32>
    %221 = arith.addf %220, %209 : vector<2x32xf32>
    %222 = arith.negf %221 : vector<2x32xf32>
    %223 = math.exp %222 : vector<2x32xf32>
    %cst_70 = arith.constant 1.000000e+00 : f32
    %224 = vector.broadcast %cst_70 : f32 to vector<2x32xf32>
    %225 = arith.addf %224, %223 : vector<2x32xf32>
    %226 = arith.divf %224, %225 : vector<2x32xf32>
    %227 = vector.extract_strided_slice %36 {offsets = [10, 0], sizes = [2, 32], strides = [1, 1]} : vector<16x32xf32> to vector<2x32xf32>
    %228 = arith.mulf %219, %212 : vector<2x32xf32>
    %229 = arith.addf %227, %228 : vector<2x32xf32>
    %230 = math.tanh %229 : vector<2x32xf32>
    %cst_71 = arith.constant 1.000000e+00 : f32
    %231 = vector.broadcast %cst_71 : f32 to vector<2x32xf32>
    %232 = arith.subf %231, %226 : vector<2x32xf32>
    %233 = arith.mulf %232, %230 : vector<2x32xf32>
    %234 = arith.mulf %226, %202 : vector<2x32xf32>
    %235 = arith.addf %233, %234 : vector<2x32xf32>
    %236 = arith.truncf %235 : vector<2x32xf32> to vector<2x32xbf16>
    %cst_72 = arith.constant dense<0.000000e+00> : vector<2x32xf32>
    %237 = tpu.matmul %236, %15, %cst_72 {dimension_numbers = #tpu.dot_dimension_numbers<[1], [0], [0], [1], [0, 0, 1, 1], [], []>} : vector<2x32xbf16>, vector<32x32xbf16>, vector<2x32xf32> -> vector<2x32xf32>
    %238 = vector.broadcast %4 : vector<1x32xf32> to vector<2x32xf32>
    %239 = arith.addf %237, %238 : vector<2x32xf32>
    %cst_73 = arith.constant dense<0.000000e+00> : vector<2x32xf32>
    %240 = tpu.matmul %236, %17, %cst_73 {dimension_numbers = #tpu.dot_dimension_numbers<[1], [0], [0], [1], [0, 0, 1, 1], [], []>} : vector<2x32xbf16>, vector<32x32xbf16>, vector<2x32xf32> -> vector<2x32xf32>
    %241 = vector.broadcast %5 : vector<1x32xf32> to vector<2x32xf32>
    %242 = arith.addf %240, %241 : vector<2x32xf32>
    %cst_74 = arith.constant dense<0.000000e+00> : vector<2x32xf32>
    %243 = tpu.matmul %236, %19, %cst_74 {dimension_numbers = #tpu.dot_dimension_numbers<[1], [0], [0], [1], [0, 0, 1, 1], [], []>} : vector<2x32xbf16>, vector<32x32xbf16>, vector<2x32xf32> -> vector<2x32xf32>
    %244 = vector.broadcast %6 : vector<1x32xf32> to vector<2x32xf32>
    %245 = arith.addf %243, %244 : vector<2x32xf32>
    %246 = vector.extract_strided_slice %30 {offsets = [12, 0], sizes = [2, 32], strides = [1, 1]} : vector<16x32xf32> to vector<2x32xf32>
    %247 = arith.addf %246, %239 : vector<2x32xf32>
    %248 = arith.negf %247 : vector<2x32xf32>
    %249 = math.exp %248 : vector<2x32xf32>
    %cst_75 = arith.constant 1.000000e+00 : f32
    %250 = vector.broadcast %cst_75 : f32 to vector<2x32xf32>
    %251 = arith.addf %250, %249 : vector<2x32xf32>
    %252 = arith.divf %250, %251 : vector<2x32xf32>
    %253 = vector.extract_strided_slice %33 {offsets = [12, 0], sizes = [2, 32], strides = [1, 1]} : vector<16x32xf32> to vector<2x32xf32>
    %254 = arith.addf %253, %242 : vector<2x32xf32>
    %255 = arith.negf %254 : vector<2x32xf32>
    %256 = math.exp %255 : vector<2x32xf32>
    %cst_76 = arith.constant 1.000000e+00 : f32
    %257 = vector.broadcast %cst_76 : f32 to vector<2x32xf32>
    %258 = arith.addf %257, %256 : vector<2x32xf32>
    %259 = arith.divf %257, %258 : vector<2x32xf32>
    %260 = vector.extract_strided_slice %36 {offsets = [12, 0], sizes = [2, 32], strides = [1, 1]} : vector<16x32xf32> to vector<2x32xf32>
    %261 = arith.mulf %252, %245 : vector<2x32xf32>
    %262 = arith.addf %260, %261 : vector<2x32xf32>
    %263 = math.tanh %262 : vector<2x32xf32>
    %cst_77 = arith.constant 1.000000e+00 : f32
    %264 = vector.broadcast %cst_77 : f32 to vector<2x32xf32>
    %265 = arith.subf %264, %259 : vector<2x32xf32>
    %266 = arith.mulf %265, %263 : vector<2x32xf32>
    %267 = arith.mulf %259, %235 : vector<2x32xf32>
    %268 = arith.addf %266, %267 : vector<2x32xf32>
    %269 = arith.truncf %268 : vector<2x32xf32> to vector<2x32xbf16>
    %cst_78 = arith.constant dense<0.000000e+00> : vector<2x32xf32>
    %270 = tpu.matmul %269, %15, %cst_78 {dimension_numbers = #tpu.dot_dimension_numbers<[1], [0], [0], [1], [0, 0, 1, 1], [], []>} : vector<2x32xbf16>, vector<32x32xbf16>, vector<2x32xf32> -> vector<2x32xf32>
    %271 = vector.broadcast %4 : vector<1x32xf32> to vector<2x32xf32>
    %272 = arith.addf %270, %271 : vector<2x32xf32>
    %cst_79 = arith.constant dense<0.000000e+00> : vector<2x32xf32>
    %273 = tpu.matmul %269, %17, %cst_79 {dimension_numbers = #tpu.dot_dimension_numbers<[1], [0], [0], [1], [0, 0, 1, 1], [], []>} : vector<2x32xbf16>, vector<32x32xbf16>, vector<2x32xf32> -> vector<2x32xf32>
    %274 = vector.broadcast %5 : vector<1x32xf32> to vector<2x32xf32>
    %275 = arith.addf %273, %274 : vector<2x32xf32>
    %cst_80 = arith.constant dense<0.000000e+00> : vector<2x32xf32>
    %276 = tpu.matmul %269, %19, %cst_80 {dimension_numbers = #tpu.dot_dimension_numbers<[1], [0], [0], [1], [0, 0, 1, 1], [], []>} : vector<2x32xbf16>, vector<32x32xbf16>, vector<2x32xf32> -> vector<2x32xf32>
    %277 = vector.broadcast %6 : vector<1x32xf32> to vector<2x32xf32>
    %278 = arith.addf %276, %277 : vector<2x32xf32>
    %279 = vector.extract_strided_slice %30 {offsets = [14, 0], sizes = [2, 32], strides = [1, 1]} : vector<16x32xf32> to vector<2x32xf32>
    %280 = arith.addf %279, %272 : vector<2x32xf32>
    %281 = arith.negf %280 : vector<2x32xf32>
    %282 = math.exp %281 : vector<2x32xf32>
    %cst_81 = arith.constant 1.000000e+00 : f32
    %283 = vector.broadcast %cst_81 : f32 to vector<2x32xf32>
    %284 = arith.addf %283, %282 : vector<2x32xf32>
    %285 = arith.divf %283, %284 : vector<2x32xf32>
    %286 = vector.extract_strided_slice %33 {offsets = [14, 0], sizes = [2, 32], strides = [1, 1]} : vector<16x32xf32> to vector<2x32xf32>
    %287 = arith.addf %286, %275 : vector<2x32xf32>
    %288 = arith.negf %287 : vector<2x32xf32>
    %289 = math.exp %288 : vector<2x32xf32>
    %cst_82 = arith.constant 1.000000e+00 : f32
    %290 = vector.broadcast %cst_82 : f32 to vector<2x32xf32>
    %291 = arith.addf %290, %289 : vector<2x32xf32>
    %292 = arith.divf %290, %291 : vector<2x32xf32>
    %293 = vector.extract_strided_slice %36 {offsets = [14, 0], sizes = [2, 32], strides = [1, 1]} : vector<16x32xf32> to vector<2x32xf32>
    %294 = arith.mulf %285, %278 : vector<2x32xf32>
    %295 = arith.addf %293, %294 : vector<2x32xf32>
    %296 = math.tanh %295 : vector<2x32xf32>
    %cst_83 = arith.constant 1.000000e+00 : f32
    %297 = vector.broadcast %cst_83 : f32 to vector<2x32xf32>
    %298 = arith.subf %297, %292 : vector<2x32xf32>
    %299 = arith.mulf %298, %296 : vector<2x32xf32>
    %300 = arith.mulf %292, %268 : vector<2x32xf32>
    %301 = arith.addf %299, %300 : vector<2x32xf32>
    %c0_84 = arith.constant 0 : index
    %c0_85 = arith.constant 0 : index
    %302 = vector.load %arg7[%c0_84, %c0_85] : memref<2x32xf32, #tpu.memory_space<vmem>>, vector<2x32xf32>
    tpu.vector_store %arg7[%c0_84, %c0_85], %301 {strides = array<i32>} : memref<2x32xf32, #tpu.memory_space<vmem>>, vector<2x32xf32>,
    %303 = tpu.concatenate %70, %103, %136, %169, %202, %235, %268, %301 in 0 : vector<2x32xf32>, vector<2x32xf32>, vector<2x32xf32>, vector<2x32xf32>, vector<2x32xf32>, vector<2x32xf32>, vector<2x32xf32>, vector<2x32xf32> -> vector<16x32xf32>
    %304 = arith.truncf %303 : vector<16x32xf32> to vector<16x32xbf16>
    %c0_86 = arith.constant 0 : index
    %c0_87 = arith.constant 0 : index
    %305 = vector.load %arg4[%c0_86, %c0_87] : memref<32x8xbf16, #tpu.memory_space<vmem>>, vector<32x8xbf16>
    %cst_88 = arith.constant dense<0.000000e+00> : vector<16x8xf32>
    %306 = tpu.matmul %304, %305, %cst_88 {dimension_numbers = #tpu.dot_dimension_numbers<[1], [0], [0], [1], [0, 0, 1, 1], [], []>} : vector<16x32xbf16>, vector<32x8xbf16>, vector<16x8xf32> -> vector<16x8xf32>
    %307 = vector.broadcast %7 : vector<1x8xf32> to vector<16x8xf32>
    %308 = arith.addf %306, %307 : vector<16x8xf32>
    %c0_89 = arith.constant 0 : index
    %c0_90 = arith.constant 0 : index
    %309 = vector.load %arg6[%c0_89, %c0_90] : memref<16x8xf32, #tpu.memory_space<vmem>>, vector<16x8xf32>
    tpu.vector_store %arg6[%c0_89, %c0_90], %308 {strides = array<i32>} : memref<16x8xf32, #tpu.memory_space<vmem>>, vector<16x8xf32>,
    return
  }
}

</mosaic_0001>

<bundles_post_ra>
// kernel: rnn_fast_agent_forward.1
= control target key start
LH: loop header
LB: loop body
LE: loop exit
PB: predicated region body
PF: predicated region fallthrough
CT: control target
= control target key end

     0   :  { %13 = vsyncpa [#allocation3], 0  ;;  %s2673_s0 = inlined_call_operand.vmem [shape: bf16[16,24], index: 0, kind: input, shape index: {}]   ;;  %s2674_s1 = inlined_call_operand.vmem [shape: f32[2,32], index: 1, kind: input, shape index: {}]   ;;  %s2675_s2 = inlined_call_operand.vmem [shape: bf16[24,32], index: 2, kind: input, shape index: {}]   ;;  %s2676_s3 = inlined_call_operand.hbm [shape: bf16[6,32,32], index: 3, kind: input, shape index: {}]   ;;  %s2677_s4 = inlined_call_operand.vmem [shape: bf16[32,8], index: 4, kind: input, shape index: {}]   ;;  %s2678_s5 = inlined_call_operand.vmem [shape: f32[8,32], index: 5, kind: input, shape index: {}]   ;;  %s2679_s6 = inlined_call_operand.vmem [shape: f32[16,8], index: 6, kind: output, shape index: {0}]   ;;  %s2680_s7 = inlined_call_operand.hbm [shape: f32[2,32], index: 7, kind: output, shape index: {1}]  }
   0x1   :  { %14 = vsyncpa [#allocation4], 0  ;;  %s2255_s24 = smov [#allocation2]  }
   0x2   :  { %s26_s25 = sshll.u32 %s2255_s24, 4  ;;  %s27_s25 = int_to_ptr.vmem [resolvable:$true] %s26_s25 }
   0x3   :  { %s2219_s26 = scalar_lea.vmem %s27_s25, 1536  ;;  %p2224_p1 = scmp.lt.s32.totalorder %s27_s25, %s27_s25 }
   0x4   :  { %p2220_p0 = scmp.ne.s32.totalorder %s27_s25, %s2219_s26  ;;  %p2225_p2 = scmp.lt.s32.totalorder %s2219_s26, %s2219_s26 }
   0x6   :  { %p2226_p3 = por %p2225_p2, %p2224_p1 }
   0x8   :  { %p2227_p4 = pnand %p2226_p3, %p2220_p0 }
   0xa   :  { %2230 = shalt.err (!%p2227_p4)
}
   0xb   :  { %s2256_s27 = smov 64   ;;  %s2257_s28 = smov 4  }
   0xc   :  { %32 = dma.hbm_to_vmem [thread:$0]  %s2676_s3, 1536, %s27_s25, [#allocation3], %s2256_s27, %s2256_s27, %s2257_s28  }
   0xd   :  { %2251 = dma.done.wait [#allocation3], 1536  }
   0xe   :  { %2252 = vsyncadd [#allocation3], 4294965760  ;;  %v2258_v0 = vmov 0.0   ;;  %vm2259_vm0 = vmmov 0   ;;  %vm105_vm1 = vcmask 1043456   ;;  %v2115_v3 = vld [vmem:[%s2675_s2] sm:$0xff]  }
   0xf   :  { %1876 = vmatprep.subr.bf16.mxu0 %v2258_v0  ;;  %1880 = vmatprep.mubr.msk.bf16.mxu0 %vm2259_vm0, %v2258_v0  ;;  %v2114_v1 = vld [vmem:[%s2675_s2 + $0x8] ss:$0 sps:$4 sm:$0xff]   ;;  %vm101_vm2 = vcmask 195584   ;;  %v2116_v4 = vld [vmem:[%s2673_s0] sm:$0xff]   ;;  %v2117_v5 = vld [vmem:[#allocation2 + $0x18] sm:$0xff]   ;;  %vm169_vm3 = vcmask 261120  }
  0x10   :  { %1884 = vmatprep.subr.bf16.mxu1 %v2258_v0  ;;  %1888 = vmatprep.mubr.msk.bf16.mxu1 %vm2259_vm0, %v2258_v0  ;;  %v107_v2 = vsel %vm105_vm1, %v2114_v1, 0  ;;  %v2118_v6 = vld [vmem:[#allocation2 + $0x8] sm:$0xff]   ;;  %v2119_v7 = vld [vmem:[#allocation2 + $0x10] sm:$0xff]   ;;  %v2120_v8 = vld [vmem:[#allocation2] sm:$0xff]   ;;  %vm1624_vm4 = vcmask 1041408   ;;  %vm1627_vm5 = vcmask 1045504  }
  0x11   :  { %1877 = vmatpush3.bf16.msra.mxu0 %v107_v2  ;;  %1885 = vmatpush3.bf16.msra.mxu1 %v2118_v6  ;;  %v1719_v9 = vld [vmem:[%s2678_s5] ss:$0 sm:$0xff]  ;;  %v2331_v18 = vld [vmem:[#allocation2 + $0x38] sm:$0xff]   ;;  %v2122_v19 = vld [vmem:[#allocation2 + $0x28] sm:$0xff]   ;;  %vm1622_vm6 = vcmask 261126  }
  0x12   :  { %1878 = vmatprep.subr.bf16.mxu0 %v2258_v0  ;;  %1886 = vmatprep.subr.bf16.mxu1 %v2258_v0  ;;  %v2336_v21 = vld [vmem:[#allocation2 + $0x30] sm:$0xff]   ;;  %v2124_v22 = vld [vmem:[#allocation2 + $0x20] sm:$0xff]   ;;  %v2352_v25 = vld [vmem:[#allocation2 + $0x48] sm:$0xff]  }
  0x13   :  { %v2341_v23 = vld [vmem:[%s2674_s1] sm:$0x3]  ;;  %v2356_v26 = vld [vmem:[#allocation2 + $0x58] sm:$0xff]   ;;  %v2367_v28 = vld [vmem:[#allocation2 + $0x50] sm:$0xff]  }
  0x14   :  { %v329_v24 = vpack.c.bf16 %v2341_v23, %v2341_v23  ;;  %v2361_v27 = vld [vmem:[#allocation2 + $0x40] sm:$0xff]  }
  0x15   :  { %1879 = vmatpush3.bf16.msra.mxu0 %v2115_v3  ;;  %1887 = vmatpush3.bf16.msra.mxu1 %v2120_v8  ;;  %v1724_v33 = vld [vmem:[%s2678_s5 + $0x1] ss:$0 sm:$0xff]  ;;  %v1728_v34 = vld [vmem:[%s2678_s5 + $0x2] ss:$0 sm:$0xff]  ;;  %v2403_v41 = vld [vmem:[%s2678_s5 + $0x4] ss:$0 sm:$0xff] }
  0x16   :  { %1892 = vmatprep.subr.bf16.mxu0 %v2258_v0  ;;  %1900 = vmatprep.subr.bf16.mxu1 %v2258_v0  ;;  %v1732_v49 = vld [vmem:[%s2678_s5 + $0x3] ss:$0 sm:$0xff]  ;;  %v2417_v56 = vld [vmem:[%s2678_s5 + $0x5] ss:$0 sm:$0xff] }
  0x18   :  { %1881 = vmatmul.mubr.msk.bf16.vlgmr.msra.gmra.mxu0 %vm101_vm2, %v2116_v4 }
  0x19   :  { %1896 = vmatprep.mubr.msk.bf16.mxu0 %vm2259_vm0, %v2258_v0  ;;  %1893 = vmatpush3.bf16.msra.mxu0 %v2117_v5 }
  0x1a   :  { %1894 = vmatprep.subr.bf16.mxu0 %v2258_v0 }
  0x1d   :  { %1895 = vmatpush3.bf16.msra.mxu0 %v2119_v7 }
  0x1e   :  { %1908 = vmatprep.subr.bf16.mxu0 %v2258_v0 }
  0xd8   :  { %v143_v10 = vpop.f32.mrf.mxu0 }
  0xd9   :  { %v144_v12 = vadd.f32 %v1719_v9, %v143_v10 }
  0xda   :  { %v1882_v11 = vpop.f32.mrf.mxu0 }
  0xdb   :  { %v150_v16 = vmax.f32 %v144_v12, 0.0 }
  0xdc   :  { %v146_v13 = vpop.f32.mrf.mxu0 }
  0xdd   :  { %v147_v14 = vadd.f32 %v1719_v9, %v146_v13  ;;  %v2426_v9 = vld [vmem:[%s2678_s5 + $0x6] ss:$0 sm:$0xff] }
  0xde   :  { %v1883_v15 = vpop.f32.mrf.mxu0 }
  0xdf   :  { %v151_v17 = vmax.f32 %v147_v14, 0.0 }
  0xe1   :  { %v152_v20 = vpack.c.bf16 %v151_v17, %v150_v16 }
  0xe3   :  { %1889 = vmatmul.mubr.msk.bf16.vlgmr.msra.gmra.mxu1 %vm169_vm3, %v152_v20  ;;  %1897 = vmatmul.mubr.msk.bf16.vlgmr.msra.gmra.mxu0 %vm169_vm3, %v152_v20 }
  0xe4   :  { %1909 = vmatpush3.bf16.msra.mxu0 %v2331_v18  ;;  %1901 = vmatpush3.bf16.msra.mxu1 %v2122_v19 }
  0xe5   :  { %1910 = vmatprep.subr.bf16.mxu0 %v2258_v0  ;;  %1902 = vmatprep.subr.bf16.mxu1 %v2258_v0 }
  0xe6   :  { %1904 = vmatprep.mubr.msk.bf16.mxu1 %vm2259_vm0, %v2258_v0  ;;  %1912 = vmatprep.mubr.msk.bf16.mxu0 %vm2259_vm0, %v2258_v0 }
  0xe8   :  { %1911 = vmatpush3.bf16.msra.mxu0 %v2336_v21  ;;  %1903 = vmatpush3.bf16.msra.mxu1 %v2124_v22 }
  0xe9   :  { %1916 = vmatprep.subr.bf16.mxu1 %v2258_v0  ;;  %1924 = vmatprep.subr.bf16.mxu0 %v2258_v0 }
  0xeb   :  { %1905 = vmatmul.mubr.msk.bf16.vlgmr.msra.gmra.mxu1 %vm169_vm3, %v152_v20  ;;  %1913 = vmatmul.mubr.msk.bf16.vlgmr.msra.gmra.mxu0 %vm169_vm3, %v329_v24 }
  0xec   :  { %1917 = vmatpush3.bf16.msra.mxu1 %v2352_v25  ;;  %1920 = vmatprep.mubr.msk.bf16.mxu1 %vm2259_vm0, %v2258_v0 }
  0xed   :  { %1918 = vmatprep.subr.bf16.mxu1 %v2258_v0  ;;  %1925 = vmatpush3.bf16.msra.mxu0 %v2356_v26 }
  0xee   :  { %1926 = vmatprep.subr.bf16.mxu0 %v2258_v0  ;;  %1928 = vmatprep.mubr.msk.bf16.mxu0 %vm2259_vm0, %v2258_v0 }
  0xf0   :  { %1919 = vmatpush3.bf16.msra.mxu1 %v2361_v27 }
  0xf1   :  { %1927 = vmatpush3.bf16.msra.mxu0 %v2367_v28  ;;  %1932 = vmatprep.subr.bf16.mxu1 %v2258_v0 }
  0xf2   :  { %1940 = vmatprep.subr.bf16.mxu0 %v2258_v0 }
  0xf3   :  { %1921 = vmatmul.mubr.msk.bf16.vlgmr.msra.gmra.mxu1 %vm169_vm3, %v329_v24 }
  0xf4   :  { %1929 = vmatmul.mubr.msk.bf16.vlgmr.msra.gmra.mxu0 %vm169_vm3, %v329_v24  ;;  %1933 = vmatpush3.bf16.msra.mxu1 %v2331_v18 }
  0xf5   :  { %1941 = vmatpush3.bf16.msra.mxu0 %v2352_v25  ;;  %1934 = vmatprep.subr.bf16.mxu1 %v2258_v0 }
  0xf6   :  { %1942 = vmatprep.subr.bf16.mxu0 %v2258_v0  ;;  %1936 = vmatprep.mubr.msk.bf16.mxu1 %vm2259_vm0, %v2258_v0 }
  0xf7   :  { %1944 = vmatprep.mubr.msk.bf16.mxu0 %vm2259_vm0, %v2258_v0 }
  0xf8   :  { %1935 = vmatpush3.bf16.msra.mxu1 %v2336_v21 }
  0xf9   :  { %1943 = vmatpush3.bf16.msra.mxu0 %v2361_v27  ;;  %1948 = vmatprep.subr.bf16.mxu1 %v2258_v0 }
  0xfa   :  { %1956 = vmatprep.subr.bf16.mxu0 %v2258_v0 }
 0x1a3   :  { %v207_v29 = vpop.f32.mrf.mxu1  ;;  %v264_v30 = vpop.f32.mrf.mxu0 }
 0x1a4   :  { %v2405_v44 = vadd.f32 %v1724_v33, %v207_v29  ;;  %v2419_v58 = vadd.f32 %v1728_v34, %v264_v30 }
 0x1a5   :  { %v1890_v31 = vpop.f32.mrf.mxu1  ;;  %v1898_v32 = vpop.f32.mrf.mxu0 }
 0x1a7   :  { %v210_v35 = vpop.f32.mrf.mxu1  ;;  %v267_v36 = vpop.f32.mrf.mxu0 }
 0x1a8   :  { %v2396_v37 = vadd.f32 %v1724_v33, %v210_v35  ;;  %v2398_v38 = vadd.f32 %v1728_v34, %v267_v36 }
 0x1a9   :  { %v1891_v39 = vpop.f32.mrf.mxu1  ;;  %v1899_v40 = vpop.f32.mrf.mxu0 }
 0x1ab   :  { %v321_v42 = vpop.f32.mrf.mxu1  ;;  %v383_v43 = vpop.f32.mrf.mxu0 }
 0x1ac   :  { %v384_v45 = vadd.f32 %v2403_v41, %v383_v43  ;;  %v2429_v13 = vadd.f32 %v1732_v49, %v321_v42 }
 0x1ad   :  { %v1906_v46 = vpop.f32.mrf.mxu1  ;;  %v1914_v47 = vpop.f32.mrf.mxu0 }
 0x1ae   :  { %v501_v48 = vadd.f32 %v384_v45, %v2405_v44 }
 0x1af   :  { %v324_v50 = vpop.f32.mrf.mxu1  ;;  %v386_v51 = vpop.f32.mrf.mxu0 }
 0x1b0   :  { %v1748_v52 = vmul.f32 -1.442695, %v501_v48  ;;  %v2412_v53 = vadd.f32 %v1732_v49, %v324_v50 }
 0x1b1   :  { %v1907_v54 = vpop.f32.mrf.mxu1  ;;  %v1915_v55 = vpop.f32.mrf.mxu0 }
 0x1b2   :  { %2131 = vpow2.f32 %v1748_v52 }
 0x1b3   :  { %v439_v57 = vpop.f32.mrf.mxu1 }
 0x1b4   :  { %v440_v59 = vadd.f32 %v2417_v56, %v439_v57  ;;  %v495_v60 = vpop.f32.mrf.mxu0 }
 0x1b5   :  { %v1922_v61 = vpop.f32.mrf.mxu1  ;;  %v496_v11 = vadd.f32 %v2426_v9, %v495_v60 }
 0x1b6   :  { %v508_v62 = vadd.f32 %v440_v59, %v2419_v58  ;;  %v1930_v63 = vpop.f32.mrf.mxu0 }
 0x1b7   :  { %v442_v1 = vpop.f32.mrf.mxu1 }
 0x1b8   :  { %v1749_v2 = vmul.f32 -1.442695, %v508_v62  ;;  %v498_v3 = vpop.f32.mrf.mxu0 }
 0x1b9   :  { %v1923_v4 = vpop.f32.mrf.mxu1 }
 0x1ba   :  { %v1931_v5 = vpop.f32.mrf.mxu0  ;;  %2133 = vpow2.f32 %v1749_v2 }
 0x1bf   :  { %v2132_v6 = vpop.eup %2131 }
 0x1c0   :  { %v505_v7 = vadd.f32 1.0, %v2132_v6 }
 0x1c2   :  { %2135 = vrcp.f32 %v505_v7 }
 0x1c7   :  { %v2134_v8 = vpop.eup %2133 }
 0x1c8   :  { %v512_v10 = vadd.f32 1.0, %v2134_v8 }
 0x1ca   :  { %2137 = vrcp.f32 %v512_v10 }
 0x1cf   :  { %v2136_v12 = vpop.eup %2135 }
 0x1d0   :  { %v515_v14 = vmul.f32 %v2136_v12, %v496_v11 }
 0x1d2   :  { %v516_v15 = vadd.f32 %v515_v14, %v2429_v13 }
 0x1d4   :  { %2139 = vtanh.f32 %v516_v15 }
 0x1d7   :  { %v2138_v16 = vpop.eup %2137 }
 0x1d8   :  { %v518_v17 = vsub.f32 1.0, %v2138_v16  ;;  %v520_v22 = vmul.f32 %v2138_v16, %v2341_v23 }
 0x1e1   :  { %v2140_v19 = vpop.eup %2139 }
 0x1e2   :  { %v519_v20 = vmul.f32 %v2140_v19, %v518_v17 }
 0x1e4   :  { %v2433_v24 = vadd.f32 %v520_v22, %v519_v20 }
 0x1e6   :  { %v522_v29 = vpack.c.bf16 %v2433_v24, %v2433_v24  ;;  %v675_v4 = vrot.slane %v2433_v24, 6 }
 0x1e8   :  { %1937 = vmatmul.mubr.msk.bf16.vlgmr.msra.gmra.mxu1 %vm169_vm3, %v522_v29  ;;  %1945 = vmatmul.mubr.msk.bf16.vlgmr.msra.gmra.mxu0 %vm169_vm3, %v522_v29 }
 0x1e9   :  { %1949 = vmatpush3.bf16.msra.mxu1 %v2356_v26  ;;  %1952 = vmatprep.mubr.msk.bf16.mxu1 %vm2259_vm0, %v2258_v0 }
 0x1ea   :  { %1950 = vmatprep.subr.bf16.mxu1 %v2258_v0  ;;  %1957 = vmatpush3.bf16.msra.mxu0 %v2331_v18 }
 0x1eb   :  { %1958 = vmatprep.subr.bf16.mxu0 %v2258_v0  ;;  %1960 = vmatprep.mubr.msk.bf16.mxu0 %vm2259_vm0, %v2258_v0 }
 0x1ed   :  { %1951 = vmatpush3.bf16.msra.mxu1 %v2367_v28 }
 0x1ee   :  { %1964 = vmatprep.subr.bf16.mxu1 %v2258_v0  ;;  %1959 = vmatpush3.bf16.msra.mxu0 %v2336_v21 }
 0x1ef   :  { %1972 = vmatprep.subr.bf16.mxu0 %v2258_v0 }
 0x1f0   :  { %1953 = vmatmul.mubr.msk.bf16.vlgmr.msra.gmra.mxu1 %vm169_vm3, %v522_v29 }
 0x1f1   :  { %1965 = vmatpush3.bf16.msra.mxu1 %v2352_v25  ;;  %1968 = vmatprep.mubr.msk.bf16.mxu1 %vm2259_vm0, %v2258_v0 }
 0x1f2   :  { %1966 = vmatprep.subr.bf16.mxu1 %v2258_v0 }
 0x1f5   :  { %1967 = vmatpush3.bf16.msra.mxu1 %v2361_v27 }
 0x1f6   :  { %1980 = vmatprep.subr.bf16.mxu1 %v2258_v0 }
 0x2a8   :  { %v560_v23 = vpop.f32.mrf.mxu1  ;;  %v600_v30 = vpop.f32.mrf.mxu0 }
 0x2a9   :  { %v561_v31 = vadd.f32 %v2403_v41, %v560_v23  ;;  %v601_v35 = vadd.f32 %v2417_v56, %v600_v30 }
 0x2aa   :  { %v1938_v32 = vpop.f32.mrf.mxu1  ;;  %v1946_v33 = vpop.f32.mrf.mxu0 }
 0x2ab   :  { %v647_v34 = vrot.slane %v561_v31, 6  ;;  %v657_v46 = vrot.slane %v601_v35, 6 }
 0x2ac   :  { %v563_v36 = vpop.f32.mrf.mxu1  ;;  %v603_v39 = vpop.f32.mrf.mxu0 }
 0x2ad   :  { %v649_v40 = vadd.f32 %v647_v34, %v2405_v44  ;;  %v659_v49 = vadd.f32 %v657_v46, %v2419_v58 }
 0x2ae   :  { %v1939_v42 = vpop.f32.mrf.mxu1  ;;  %v1947_v43 = vpop.f32.mrf.mxu0 }
 0x2af   :  { %v1753_v45 = vmul.f32 -1.442695, %v649_v40  ;;  %v1754_v52 = vmul.f32 -1.442695, %v659_v49 }
 0x2b0   :  { %v640_v47 = vpop.f32.mrf.mxu1 }
 0x2b1   :  { %2141 = vpow2.f32 %v1753_v45  ;;  %v641_v59 = vadd.f32 %v2426_v9, %v640_v47 }
 0x2b2   :  { %v1954_v48 = vpop.f32.mrf.mxu1  ;;  %2143 = vpow2.f32 %v1754_v52 }
 0x2b3   :  { %v667_v61 = vrot.slane %v641_v59, 6 }
 0x2b4   :  { %v643_v50 = vpop.f32.mrf.mxu1 }
 0x2b6   :  { %v1955_v51 = vpop.f32.mrf.mxu1 }
 0x2be   :  { %v2142_v54 = vpop.eup %2141 }
 0x2bf   :  { %v653_v55 = vadd.f32 1.0, %v2142_v54  ;;  %v2144_v57 = vpop.eup %2143 }
 0x2c0   :  { %v663_v60 = vadd.f32 1.0, %v2144_v57 }
 0x2c1   :  { %2145 = vrcp.f32 %v653_v55 }
 0x2c2   :  { %2147 = vrcp.f32 %v663_v60 }
 0x2ce   :  { %v2146_v62 = vpop.eup %2145 }
 0x2cf   :  { %v669_v63 = vmul.f32 %v2146_v62, %v667_v61  ;;  %v2148_v2 = vpop.eup %2147 }
 0x2d0   :  { %v672_v3 = vsub.f32 1.0, %v2148_v2  ;;  %v677_v7 = vmul.f32 %v2148_v2, %v675_v4 }
 0x2d1   :  { %v670_v1 = vadd.f32 %v669_v63, %v2429_v13 }
 0x2d3   :  { %2149 = vtanh.f32 %v670_v1 }
 0x2e0   :  { %v2150_v5 = vpop.eup %2149 }
 0x2e1   :  { %v673_v6 = vmul.f32 %v2150_v5, %v672_v3 }
 0x2e3   :  { %v2465_v8 = vadd.f32 %v677_v7, %v673_v6 }
 0x2e5   :  { %v679_v10 = vpack.c.bf16 %v2465_v8, %v2465_v8  ;;  %v834_v57 = vrot.slane %v2465_v8, 6  ;;  %v1625_v63 = vsel %vm1624_vm4, %v2433_v24, %v2465_v8 }
 0x2e7   :  { %v681_v11 = vrot.slane %v679_v10, 1 }
 0x2e9   :  { %1961 = vmatmul.mubr.msk.bf16.vlgmr.msra.gmra.mxu0 %vm169_vm3, %v681_v11  ;;  %1969 = vmatmul.mubr.msk.bf16.vlgmr.msra.gmra.mxu1 %vm169_vm3, %v681_v11 }
 0x2ea   :  { %1973 = vmatpush3.bf16.msra.mxu0 %v2356_v26  ;;  %1976 = vmatprep.mubr.msk.bf16.mxu0 %vm2259_vm0, %v2258_v0 }
 0x2eb   :  { %1974 = vmatprep.subr.bf16.mxu0 %v2258_v0  ;;  %1981 = vmatpush3.bf16.msra.mxu1 %v2331_v18 }
 0x2ec   :  { %1982 = vmatprep.subr.bf16.mxu1 %v2258_v0  ;;  %1984 = vmatprep.mubr.msk.bf16.mxu1 %vm2259_vm0, %v2258_v0 }
 0x2ee   :  { %1975 = vmatpush3.bf16.msra.mxu0 %v2367_v28 }
 0x2ef   :  { %1988 = vmatprep.subr.bf16.mxu0 %v2258_v0  ;;  %1983 = vmatpush3.bf16.msra.mxu1 %v2336_v21 }
 0x2f0   :  { %1996 = vmatprep.subr.bf16.mxu1 %v2258_v0 }
 0x2f1   :  { %1977 = vmatmul.mubr.msk.bf16.vlgmr.msra.gmra.mxu0 %vm169_vm3, %v681_v11 }
 0x2f2   :  { %1989 = vmatpush3.bf16.msra.mxu0 %v2352_v25  ;;  %1992 = vmatprep.mubr.msk.bf16.mxu0 %vm2259_vm0, %v2258_v0 }
 0x2f3   :  { %1990 = vmatprep.subr.bf16.mxu0 %v2258_v0 }
 0x2f6   :  { %1991 = vmatpush3.bf16.msra.mxu0 %v2361_v27 }
 0x2f7   :  { %2004 = vmatprep.subr.bf16.mxu0 %v2258_v0 }
 0x3a9   :  { %v719_v12 = vpop.f32.mrf.mxu0  ;;  %v759_v14 = vpop.f32.mrf.mxu1 }
 0x3aa   :  { %v720_v15 = vadd.f32 %v2403_v41, %v719_v12  ;;  %v760_v20 = vadd.f32 %v2417_v56, %v759_v14 }
 0x3ab   :  { %v1962_v16 = vpop.f32.mrf.mxu0  ;;  %v1970_v17 = vpop.f32.mrf.mxu1 }
 0x3ac   :  { %v806_v19 = vrot.slane %v720_v15, 4  ;;  %v816_v33 = vrot.slane %v760_v20, 4 }
 0x3ad   :  { %v722_v22 = vpop.f32.mrf.mxu0  ;;  %v762_v29 = vpop.f32.mrf.mxu1 }
 0x3ae   :  { %v808_v23 = vadd.f32 %v806_v19, %v2405_v44  ;;  %v818_v36 = vadd.f32 %v816_v33, %v2419_v58 }
 0x3af   :  { %v1963_v30 = vpop.f32.mrf.mxu0  ;;  %v1971_v31 = vpop.f32.mrf.mxu1 }
 0x3b0   :  { %v1758_v32 = vmul.f32 -1.442695, %v808_v23  ;;  %v1759_v42 = vmul.f32 -1.442695, %v818_v36 }
 0x3b1   :  { %v799_v34 = vpop.f32.mrf.mxu0 }
 0x3b2   :  { %2151 = vpow2.f32 %v1758_v32  ;;  %v800_v47 = vadd.f32 %v2426_v9, %v799_v34 }
 0x3b3   :  { %v1978_v35 = vpop.f32.mrf.mxu0  ;;  %2153 = vpow2.f32 %v1759_v42 }
 0x3b4   :  { %v826_v49 = vrot.slane %v800_v47, 4 }
 0x3b5   :  { %v802_v39 = vpop.f32.mrf.mxu0 }
 0x3b7   :  { %v1979_v40 = vpop.f32.mrf.mxu0 }
 0x3bf   :  { %v2152_v43 = vpop.eup %2151 }
 0x3c0   :  { %v812_v45 = vadd.f32 1.0, %v2152_v43  ;;  %v2154_v46 = vpop.eup %2153 }
 0x3c1   :  { %v822_v48 = vadd.f32 1.0, %v2154_v46 }
 0x3c2   :  { %2155 = vrcp.f32 %v812_v45 }
 0x3c3   :  { %2157 = vrcp.f32 %v822_v48 }
 0x3cf   :  { %v2156_v50 = vpop.eup %2155 }
 0x3d0   :  { %v828_v51 = vmul.f32 %v2156_v50, %v826_v49  ;;  %v2158_v54 = vpop.eup %2157 }
 0x3d1   :  { %v831_v55 = vsub.f32 1.0, %v2158_v54  ;;  %v836_v61 = vmul.f32 %v2158_v54, %v834_v57 }
 0x3d2   :  { %v829_v52 = vadd.f32 %v828_v51, %v2429_v13 }
 0x3d4   :  { %2159 = vtanh.f32 %v829_v52 }
 0x3e1   :  { %v2160_v59 = vpop.eup %2159 }
 0x3e2   :  { %v832_v60 = vmul.f32 %v2160_v59, %v831_v55 }
 0x3e4   :  { %v2497_v62 = vadd.f32 %v836_v61, %v832_v60 }
 0x3e6   :  { %v838_v1 = vpack.c.bf16 %v2497_v62, %v2497_v62  ;;  %v2506_v2 = vsel %vm105_vm1, %v1625_v63, %v2497_v62  ;;  %v993_v45 = vrot.slane %v2497_v62, 6 }
 0x3e8   :  { %v840_v3 = vrot.slane %v838_v1, 2 }
 0x3ea   :  { %1985 = vmatmul.mubr.msk.bf16.vlgmr.msra.gmra.mxu1 %vm169_vm3, %v840_v3  ;;  %1993 = vmatmul.mubr.msk.bf16.vlgmr.msra.gmra.mxu0 %vm169_vm3, %v840_v3 }
 0x3eb   :  { %1997 = vmatpush3.bf16.msra.mxu1 %v2356_v26  ;;  %2000 = vmatprep.mubr.msk.bf16.mxu1 %vm2259_vm0, %v2258_v0 }
 0x3ec   :  { %1998 = vmatprep.subr.bf16.mxu1 %v2258_v0  ;;  %2005 = vmatpush3.bf16.msra.mxu0 %v2331_v18 }
 0x3ed   :  { %2006 = vmatprep.subr.bf16.mxu0 %v2258_v0  ;;  %2008 = vmatprep.mubr.msk.bf16.mxu0 %vm2259_vm0, %v2258_v0 }
 0x3ef   :  { %1999 = vmatpush3.bf16.msra.mxu1 %v2367_v28 }
 0x3f0   :  { %2012 = vmatprep.subr.bf16.mxu1 %v2258_v0  ;;  %2007 = vmatpush3.bf16.msra.mxu0 %v2336_v21 }
 0x3f1   :  { %2020 = vmatprep.subr.bf16.mxu0 %v2258_v0 }
 0x3f2   :  { %2001 = vmatmul.mubr.msk.bf16.vlgmr.msra.gmra.mxu1 %vm169_vm3, %v840_v3 }
 0x3f3   :  { %2013 = vmatpush3.bf16.msra.mxu1 %v2352_v25  ;;  %2016 = vmatprep.mubr.msk.bf16.mxu1 %vm2259_vm0, %v2258_v0 }
 0x3f4   :  { %2014 = vmatprep.subr.bf16.mxu1 %v2258_v0 }
 0x3f7   :  { %2015 = vmatpush3.bf16.msra.mxu1 %v2361_v27 }
 0x3f8   :  { %2028 = vmatprep.subr.bf16.mxu1 %v2258_v0 }
 0x4aa   :  { %v878_v24 = vpop.f32.mrf.mxu1  ;;  %v918_v4 = vpop.f32.mrf.mxu0 }
 0x4ab   :  { %v879_v5 = vadd.f32 %v2403_v41, %v878_v24  ;;  %v919_v10 = vadd.f32 %v2417_v56, %v918_v4 }
 0x4ac   :  { %v1986_v6 = vpop.f32.mrf.mxu1  ;;  %v1994_v7 = vpop.f32.mrf.mxu0 }
 0x4ad   :  { %v965_v8 = vrot.slane %v879_v5, 2  ;;  %v975_v19 = vrot.slane %v919_v10, 2 }
 0x4ae   :  { %v881_v11 = vpop.f32.mrf.mxu1  ;;  %v921_v12 = vpop.f32.mrf.mxu0 }
 0x4af   :  { %v967_v14 = vadd.f32 %v965_v8, %v2405_v44  ;;  %v977_v29 = vadd.f32 %v975_v19, %v2419_v58 }
 0x4b0   :  { %v1987_v15 = vpop.f32.mrf.mxu1  ;;  %v1995_v16 = vpop.f32.mrf.mxu0 }
 0x4b1   :  { %v1763_v17 = vmul.f32 -1.442695, %v967_v14  ;;  %v1764_v31 = vmul.f32 -1.442695, %v977_v29 }
 0x4b2   :  { %v958_v20 = vpop.f32.mrf.mxu1 }
 0x4b3   :  { %2161 = vpow2.f32 %v1763_v17  ;;  %v959_v35 = vadd.f32 %v2426_v9, %v958_v20 }
 0x4b4   :  { %v2002_v22 = vpop.f32.mrf.mxu1  ;;  %2163 = vpow2.f32 %v1764_v31 }
 0x4b5   :  { %v985_v36 = vrot.slane %v959_v35, 2 }
 0x4b6   :  { %v961_v23 = vpop.f32.mrf.mxu1 }
 0x4b8   :  { %v2003_v30 = vpop.f32.mrf.mxu1 }
 0x4c0   :  { %v2162_v32 = vpop.eup %2161 }
 0x4c1   :  { %v971_v33 = vadd.f32 1.0, %v2162_v32  ;;  %v2164_v34 = vpop.eup %2163 }
 0x4c2   :  { %v981_v44 = vadd.f32 1.0, %v2164_v34 }
 0x4c3   :  { %2165 = vrcp.f32 %v971_v33 }
 0x4c4   :  { %2167 = vrcp.f32 %v981_v44 }
 0x4d0   :  { %v2166_v39 = vpop.eup %2165 }
 0x4d1   :  { %v987_v40 = vmul.f32 %v2166_v39, %v985_v36  ;;  %v2168_v43 = vpop.eup %2167 }
 0x4d2   :  { %v990_v58 = vsub.f32 1.0, %v2168_v43  ;;  %v995_v48 = vmul.f32 %v2168_v43, %v993_v45 }
 0x4d3   :  { %v988_v42 = vadd.f32 %v987_v40, %v2429_v13 }
 0x4d5   :  { %2169 = vtanh.f32 %v988_v42 }
 0x4e2   :  { %v2170_v46 = vpop.eup %2169 }
 0x4e3   :  { %v991_v47 = vmul.f32 %v2170_v46, %v990_v58 }
 0x4e5   :  { %v996_v49 = vadd.f32 %v995_v48, %v991_v47 }
 0x4e7   :  { %v997_v50 = vpack.c.bf16 %v996_v49, %v996_v49  ;;  %v2538_v51 = vsel %vm1627_vm5, %v2506_v2, %v996_v49  ;;  %v1143_v29 = vrot.slane %v996_v49, 6 }
 0x4e9   :  { %v999_v52 = vrot.slane %v997_v50, 3 }
 0x4eb   :  { %2009 = vmatmul.mubr.msk.bf16.vlgmr.msra.gmra.mxu0 %vm169_vm3, %v999_v52  ;;  %2017 = vmatmul.mubr.msk.bf16.vlgmr.msra.gmra.mxu1 %vm169_vm3, %v999_v52 }
 0x4ec   :  { %2021 = vmatpush3.bf16.msra.mxu0 %v2356_v26  ;;  %2024 = vmatprep.mubr.msk.bf16.mxu0 %vm2259_vm0, %v2258_v0 }
 0x4ed   :  { %2022 = vmatprep.subr.bf16.mxu0 %v2258_v0  ;;  %2029 = vmatpush3.bf16.msra.mxu1 %v2331_v18 }
 0x4ee   :  { %2030 = vmatprep.subr.bf16.mxu1 %v2258_v0  ;;  %2032 = vmatprep.mubr.msk.bf16.mxu1 %vm2259_vm0, %v2258_v0 }
 0x4f0   :  { %2023 = vmatpush3.bf16.msra.mxu0 %v2367_v28 }
 0x4f1   :  { %2036 = vmatprep.subr.bf16.mxu0 %v2258_v0  ;;  %2031 = vmatpush3.bf16.msra.mxu1 %v2336_v21 }
 0x4f2   :  { %2044 = vmatprep.subr.bf16.mxu1 %v2258_v0 }
 0x4f3   :  { %2025 = vmatmul.mubr.msk.bf16.vlgmr.msra.gmra.mxu0 %vm169_vm3, %v999_v52 }
 0x4f4   :  { %2037 = vmatpush3.bf16.msra.mxu0 %v2352_v25  ;;  %2040 = vmatprep.mubr.msk.bf16.mxu0 %vm2259_vm0, %v2258_v0 }
 0x4f5   :  { %2038 = vmatprep.subr.bf16.mxu0 %v2258_v0 }
 0x4f8   :  { %2039 = vmatpush3.bf16.msra.mxu0 %v2361_v27 }
 0x4f9   :  { %2052 = vmatprep.subr.bf16.mxu0 %v2258_v0 }
 0x5ab   :  { %v1037_v13 = vpop.f32.mrf.mxu0  ;;  %v1077_v54 = vpop.f32.mrf.mxu1 }
 0x5ac   :  { %v1038_v55 = vadd.f32 %v2403_v41, %v1037_v13  ;;  %v1078_v1 = vadd.f32 %v2417_v56, %v1077_v54 }
 0x5ad   :  { %v2010_v57 = vpop.f32.mrf.mxu0  ;;  %v2018_v59 = vpop.f32.mrf.mxu1 }
 0x5ae   :  { %v1123_v60 = vadd.f32 %v1038_v55, %v2396_v37  ;;  %v1130_v4 = vadd.f32 %v1078_v1, %v2398_v38 }
 0x5af   :  { %v1040_v61 = vpop.f32.mrf.mxu0  ;;  %v1080_v62 = vpop.f32.mrf.mxu1 }
 0x5b0   :  { %v1768_v63 = vmul.f32 -1.442695, %v1123_v60  ;;  %v1769_v7 = vmul.f32 -1.442695, %v1130_v4 }
 0x5b1   :  { %v2011_v2 = vpop.f32.mrf.mxu0  ;;  %v2019_v3 = vpop.f32.mrf.mxu1 }
 0x5b2   :  { %2171 = vpow2.f32 %v1768_v63 }
 0x5b3   :  { %v1117_v24 = vpop.f32.mrf.mxu0  ;;  %2173 = vpow2.f32 %v1769_v7 }
 0x5b4   :  { %v1118_v15 = vadd.f32 %v2426_v9, %v1117_v24 }
 0x5b5   :  { %v2026_v5 = vpop.f32.mrf.mxu0 }
 0x5b7   :  { %v1120_v6 = vpop.f32.mrf.mxu0 }
 0x5b9   :  { %v2027_v8 = vpop.f32.mrf.mxu0 }
 0x5bf   :  { %v2172_v10 = vpop.eup %2171 }
 0x5c0   :  { %v1127_v11 = vadd.f32 1.0, %v2172_v10  ;;  %v2174_v12 = vpop.eup %2173 }
 0x5c1   :  { %v1134_v14 = vadd.f32 1.0, %v2174_v12 }
 0x5c2   :  { %2175 = vrcp.f32 %v1127_v11 }
 0x5c3   :  { %2177 = vrcp.f32 %v1134_v14 }
 0x5cf   :  { %v2176_v16 = vpop.eup %2175 }
 0x5d0   :  { %v1137_v17 = vmul.f32 %v2176_v16, %v1118_v15  ;;  %v2178_v20 = vpop.eup %2177 }
 0x5d1   :  { %v1140_v22 = vsub.f32 1.0, %v2178_v20  ;;  %v1145_v31 = vmul.f32 %v2178_v20, %v1143_v29 }
 0x5d2   :  { %v1138_v19 = vadd.f32 %v1137_v17, %v2412_v53 }
 0x5d4   :  { %2179 = vtanh.f32 %v1138_v19 }
 0x5e1   :  { %v2180_v23 = vpop.eup %2179 }
 0x5e2   :  { %v1141_v30 = vmul.f32 %v2180_v23, %v1140_v22 }
 0x5e4   :  { %v2567_v32 = vadd.f32 %v1145_v31, %v1141_v30 }
 0x5e6   :  { %v1147_v33 = vpack.c.bf16 %v2567_v32, %v2567_v32  ;;  %v1300_v6 = vrot.slane %v2567_v32, 6 }
 0x5e8   :  { %2033 = vmatmul.mubr.msk.bf16.vlgmr.msra.gmra.mxu1 %vm169_vm3, %v1147_v33  ;;  %2041 = vmatmul.mubr.msk.bf16.vlgmr.msra.gmra.mxu0 %vm169_vm3, %v1147_v33 }
 0x5e9   :  { %2045 = vmatpush3.bf16.msra.mxu1 %v2356_v26  ;;  %2048 = vmatprep.mubr.msk.bf16.mxu1 %vm2259_vm0, %v2258_v0 }
 0x5ea   :  { %2046 = vmatprep.subr.bf16.mxu1 %v2258_v0  ;;  %2053 = vmatpush3.bf16.msra.mxu0 %v2331_v18 }
 0x5eb   :  { %2054 = vmatprep.subr.bf16.mxu0 %v2258_v0  ;;  %2056 = vmatprep.mubr.msk.bf16.mxu0 %vm2259_vm0, %v2258_v0 }
 0x5ed   :  { %2047 = vmatpush3.bf16.msra.mxu1 %v2367_v28 }
 0x5ee   :  { %2060 = vmatprep.subr.bf16.mxu1 %v2258_v0  ;;  %2055 = vmatpush3.bf16.msra.mxu0 %v2336_v21 }
 0x5ef   :  { %2068 = vmatprep.subr.bf16.mxu0 %v2258_v0 }
 0x5f0   :  { %2049 = vmatmul.mubr.msk.bf16.vlgmr.msra.gmra.mxu1 %vm169_vm3, %v1147_v33 }
 0x5f1   :  { %2061 = vmatpush3.bf16.msra.mxu1 %v2352_v25  ;;  %2064 = vmatprep.mubr.msk.bf16.mxu1 %vm2259_vm0, %v2258_v0 }
 0x5f2   :  { %2062 = vmatprep.subr.bf16.mxu1 %v2258_v0 }
 0x5f5   :  { %2063 = vmatpush3.bf16.msra.mxu1 %v2361_v27 }
 0x5f6   :  { %2076 = vmatprep.subr.bf16.mxu1 %v2258_v0 }
 0x6a8   :  { %v1185_v34 = vpop.f32.mrf.mxu1  ;;  %v1225_v35 = vpop.f32.mrf.mxu0 }
 0x6a9   :  { %v1186_v44 = vadd.f32 %v2403_v41, %v1185_v34  ;;  %v1226_v42 = vadd.f32 %v2417_v56, %v1225_v35 }
 0x6aa   :  { %v2034_v36 = vpop.f32.mrf.mxu1  ;;  %v2042_v39 = vpop.f32.mrf.mxu0 }
 0x6ab   :  { %v1272_v40 = vrot.slane %v1186_v44, 6  ;;  %v1282_v49 = vrot.slane %v1226_v42, 6 }
 0x6ac   :  { %v1188_v43 = vpop.f32.mrf.mxu1  ;;  %v1228_v58 = vpop.f32.mrf.mxu0 }
 0x6ad   :  { %v1274_v45 = vadd.f32 %v1272_v40, %v2396_v37  ;;  %v1284_v13 = vadd.f32 %v1282_v49, %v2398_v38 }
 0x6ae   :  { %v2035_v46 = vpop.f32.mrf.mxu1  ;;  %v2043_v47 = vpop.f32.mrf.mxu0 }
 0x6af   :  { %v1773_v48 = vmul.f32 -1.442695, %v1274_v45  ;;  %v1774_v57 = vmul.f32 -1.442695, %v1284_v13 }
 0x6b0   :  { %v1265_v50 = vpop.f32.mrf.mxu1 }
 0x6b1   :  { %2181 = vpow2.f32 %v1773_v48  ;;  %v1266_v62 = vadd.f32 %v2426_v9, %v1265_v50 }
 0x6b2   :  { %v2050_v52 = vpop.f32.mrf.mxu1  ;;  %2183 = vpow2.f32 %v1774_v57 }
 0x6b3   :  { %v1292_v1 = vrot.slane %v1266_v62, 6 }
 0x6b4   :  { %v1268_v54 = vpop.f32.mrf.mxu1 }
 0x6b6   :  { %v2051_v55 = vpop.f32.mrf.mxu1 }
 0x6be   :  { %v2182_v59 = vpop.eup %2181 }
 0x6bf   :  { %v1278_v60 = vadd.f32 1.0, %v2182_v59  ;;  %v2184_v61 = vpop.eup %2183 }
 0x6c0   :  { %v1288_v63 = vadd.f32 1.0, %v2184_v61 }
 0x6c1   :  { %2185 = vrcp.f32 %v1278_v60 }
 0x6c2   :  { %2187 = vrcp.f32 %v1288_v63 }
 0x6ce   :  { %v2186_v2 = vpop.eup %2185 }
 0x6cf   :  { %v1294_v3 = vmul.f32 %v2186_v2, %v1292_v1  ;;  %v2188_v4 = vpop.eup %2187 }
 0x6d0   :  { %v1297_v5 = vsub.f32 1.0, %v2188_v4  ;;  %v1302_v10 = vmul.f32 %v2188_v4, %v1300_v6 }
 0x6d1   :  { %v1295_v24 = vadd.f32 %v1294_v3, %v2412_v53 }
 0x6d3   :  { %2189 = vtanh.f32 %v1295_v24 }
 0x6e0   :  { %v2190_v7 = vpop.eup %2189 }
 0x6e1   :  { %v1298_v8 = vmul.f32 %v2190_v7, %v1297_v5 }
 0x6e3   :  { %v2599_v11 = vadd.f32 %v1302_v10, %v1298_v8 }
 0x6e5   :  { %v1304_v12 = vpack.c.bf16 %v2599_v11, %v2599_v11  ;;  %v1459_v13 = vrot.slane %v2599_v11, 6  ;;  %v1629_v60 = vsel %vm1624_vm4, %v2567_v32, %v2599_v11  ;;  %v2129_v32 = vld [vmem:[%s2677_s4 + $0x8] sm:$0xff]  }
 0x6e7   :  { %v1306_v14 = vrot.slane %v1304_v12, 1 }
 0x6e9   :  { %2057 = vmatmul.mubr.msk.bf16.vlgmr.msra.gmra.mxu0 %vm169_vm3, %v1306_v14  ;;  %2065 = vmatmul.mubr.msk.bf16.vlgmr.msra.gmra.mxu1 %vm169_vm3, %v1306_v14 }
 0x6ea   :  { %2069 = vmatpush3.bf16.msra.mxu0 %v2356_v26  ;;  %2072 = vmatprep.mubr.msk.bf16.mxu0 %vm2259_vm0, %v2258_v0 }
 0x6eb   :  { %2070 = vmatprep.subr.bf16.mxu0 %v2258_v0  ;;  %2077 = vmatpush3.bf16.msra.mxu1 %v2331_v18 }
 0x6ec   :  { %2078 = vmatprep.subr.bf16.mxu1 %v2258_v0  ;;  %2080 = vmatprep.mubr.msk.bf16.mxu1 %vm2259_vm0, %v2258_v0 }
 0x6ee   :  { %2071 = vmatpush3.bf16.msra.mxu0 %v2367_v28 }
 0x6ef   :  { %2084 = vmatprep.subr.bf16.mxu0 %v2258_v0  ;;  %2079 = vmatpush3.bf16.msra.mxu1 %v2336_v21 }
 0x6f0   :  { %2092 = vmatprep.subr.bf16.mxu1 %v2258_v0 }
 0x6f1   :  { %2073 = vmatmul.mubr.msk.bf16.vlgmr.msra.gmra.mxu0 %vm169_vm3, %v1306_v14 }
 0x6f2   :  { %2085 = vmatpush3.bf16.msra.mxu0 %v2352_v25  ;;  %2088 = vmatprep.mubr.msk.bf16.mxu0 %vm2259_vm0, %v2258_v0 }
 0x6f3   :  { %2086 = vmatprep.subr.bf16.mxu0 %v2258_v0 }
 0x6f6   :  { %2087 = vmatpush3.bf16.msra.mxu0 %v2361_v27 }
 0x6f7   :  { %2100 = vmatprep.subr.bf16.mxu0 %v2258_v0 }
 0x7a9   :  { %v1344_v18 = vpop.f32.mrf.mxu0  ;;  %v1384_v15 = vpop.f32.mrf.mxu1 }
 0x7aa   :  { %v1345_v16 = vadd.f32 %v2403_v41, %v1344_v18  ;;  %v1385_v20 = vadd.f32 %v2417_v56, %v1384_v15 }
 0x7ab   :  { %v2058_v21 = vpop.f32.mrf.mxu0  ;;  %v2066_v17 = vpop.f32.mrf.mxu1 }
 0x7ac   :  { %v1431_v19 = vrot.slane %v1345_v16, 4  ;;  %v1441_v33 = vrot.slane %v1385_v20, 4 }
 0x7ad   :  { %v1347_v22 = vpop.f32.mrf.mxu0  ;;  %v1387_v25 = vpop.f32.mrf.mxu1 }
 0x7ae   :  { %v1433_v29 = vadd.f32 %v1431_v19, %v2396_v37  ;;  %v1443_v35 = vadd.f32 %v1441_v33, %v2398_v38 }
 0x7af   :  { %v2059_v23 = vpop.f32.mrf.mxu0  ;;  %v2067_v30 = vpop.f32.mrf.mxu1 }
 0x7b0   :  { %v1778_v31 = vmul.f32 -1.442695, %v1433_v29  ;;  %v1779_v39 = vmul.f32 -1.442695, %v1443_v35 }
 0x7b1   :  { %v1424_v27 = vpop.f32.mrf.mxu0 }
 0x7b2   :  { %2191 = vpow2.f32 %v1778_v31  ;;  %v1425_v58 = vadd.f32 %v2426_v9, %v1424_v27 }
 0x7b3   :  { %v2074_v34 = vpop.f32.mrf.mxu0  ;;  %2193 = vpow2.f32 %v1779_v39 }
 0x7b4   :  { %v1451_v46 = vrot.slane %v1425_v58, 4 }
 0x7b5   :  { %v1427_v44 = vpop.f32.mrf.mxu0 }
 0x7b7   :  { %v2075_v36 = vpop.f32.mrf.mxu0 }
 0x7bf   :  { %v2192_v40 = vpop.eup %2191 }
 0x7c0   :  { %v1437_v42 = vadd.f32 1.0, %v2192_v40  ;;  %v2194_v43 = vpop.eup %2193 }
 0x7c1   :  { %v1447_v45 = vadd.f32 1.0, %v2194_v43 }
 0x7c2   :  { %2195 = vrcp.f32 %v1437_v42 }
 0x7c3   :  { %2197 = vrcp.f32 %v1447_v45 }
 0x7cf   :  { %v2196_v47 = vpop.eup %2195 }
 0x7d0   :  { %v1453_v48 = vmul.f32 %v2196_v47, %v1451_v46  ;;  %v2198_v50 = vpop.eup %2197 }
 0x7d1   :  { %v1456_v52 = vsub.f32 1.0, %v2198_v50  ;;  %v1461_v57 = vmul.f32 %v2198_v50, %v1459_v13 }
 0x7d2   :  { %v1454_v49 = vadd.f32 %v1453_v48, %v2412_v53 }
 0x7d4   :  { %2199 = vtanh.f32 %v1454_v49 }
 0x7e1   :  { %v2200_v54 = vpop.eup %2199 }
 0x7e2   :  { %v1457_v55 = vmul.f32 %v2200_v54, %v1456_v52 }
 0x7e4   :  { %v1462_v59 = vadd.f32 %v1461_v57, %v1457_v55 }
 0x7e6   :  { %v1463_v61 = vpack.c.bf16 %v1462_v59, %v1462_v59  ;;  %v1630_v62 = vsel %vm105_vm1, %v1629_v60, %v1462_v59  ;;  %v1618_v31 = vrot.slane %v1462_v59, 6 }
 0x7e8   :  { %v1465_v63 = vrot.slane %v1463_v61, 2 }
 0x7ea   :  { %2081 = vmatmul.mubr.msk.bf16.vlgmr.msra.gmra.mxu1 %vm169_vm3, %v1465_v63  ;;  %2089 = vmatmul.mubr.msk.bf16.vlgmr.msra.gmra.mxu0 %vm169_vm3, %v1465_v63 }
 0x7eb   :  { %2093 = vmatpush3.bf16.msra.mxu1 %v2356_v26  ;;  %2096 = vmatprep.mubr.msk.bf16.mxu1 %vm2259_vm0, %v2258_v0  ;;  %v2130_v26 = vld [vmem:[%s2677_s4] sm:$0xff]   ;;  %s2260_s4 = smov [#allocation5]  }
 0x7ec   :  { %2094 = vmatprep.subr.bf16.mxu1 %v2258_v0  ;;  %2104 = vmatprep.mubr.msk.bf16.mxu0 %vm2259_vm0, %v2258_v0  ;;  %s1708_s30 = sshll.u32 %s2260_s4, 4  ;;  %s1709_s30 = int_to_ptr.vmem [resolvable:$true] %s1708_s30 }
 0x7ed   :  { %2101 = vmatpush3.bf16.msra.mxu0 %v2129_v32  ;;  %s2231_s8 = scalar_lea.vmem %s1709_s30, 32  ;;  %p2236_p6 = scmp.lt.s32.totalorder %s1709_s30, %s1709_s30 }
 0x7ee   :  { %2102 = vmatprep.subr.bf16.mxu0 %v2258_v0  ;;  %p2232_p5 = scmp.ne.s32.totalorder %s1709_s30, %s2231_s8  ;;  %p2237_p7 = scmp.lt.s32.totalorder %s2231_s8, %s2231_s8 }
 0x7ef   :  { %2095 = vmatpush3.bf16.msra.mxu1 %v2367_v28 }
 0x7f0   :  { %p2238_p8 = por %p2237_p7, %p2236_p6 }
 0x7f1   :  { %2103 = vmatpush3.bf16.msra.mxu0 %v2130_v26 }
 0x7f2   :  { %2097 = vmatmul.mubr.msk.bf16.vlgmr.msra.gmra.mxu1 %vm169_vm3, %v1465_v63  ;;  %p2239_p9 = pnand %p2238_p8, %p2232_p5 }
 0x8aa   :  { %v1503_v1 = vpop.f32.mrf.mxu1  ;;  %v1543_v2 = vpop.f32.mrf.mxu0 }
 0x8ab   :  { %v1504_v3 = vadd.f32 %v2403_v41, %v1503_v1  ;;  %v1544_v5 = vadd.f32 %v2417_v56, %v1543_v2 }
 0x8ac   :  { %v2082_v24 = vpop.f32.mrf.mxu1  ;;  %v2090_v28 = vpop.f32.mrf.mxu0 }
 0x8ad   :  { %v1590_v4 = vrot.slane %v1504_v3, 2  ;;  %v1600_v14 = vrot.slane %v1544_v5, 2 }
 0x8ae   :  { %v1506_v6 = vpop.f32.mrf.mxu1  ;;  %v1546_v7 = vpop.f32.mrf.mxu0 }
 0x8af   :  { %v1592_v8 = vadd.f32 %v1590_v4, %v2396_v37  ;;  %v1602_v15 = vadd.f32 %v1600_v14, %v2398_v38 }
 0x8b0   :  { %v2083_v10 = vpop.f32.mrf.mxu1  ;;  %v2091_v11 = vpop.f32.mrf.mxu0 }
 0x8b1   :  { %v1783_v12 = vmul.f32 -1.442695, %v1592_v8  ;;  %v1784_v21 = vmul.f32 -1.442695, %v1602_v15 }
 0x8b2   :  { %v1583_v18 = vpop.f32.mrf.mxu1 }
 0x8b3   :  { %2201 = vpow2.f32 %v1783_v12  ;;  %v1584_v20 = vadd.f32 %v2426_v9, %v1583_v18 }
 0x8b4   :  { %v2098_v0 = vpop.f32.mrf.mxu1  ;;  %2203 = vpow2.f32 %v1784_v21 }
 0x8b5   :  { %v1610_v22 = vrot.slane %v1584_v20, 2 }
 0x8b6   :  { %v1586_v16 = vpop.f32.mrf.mxu1 }
 0x8b8   :  { %v2099_v41 = vpop.f32.mrf.mxu1 }
 0x8c0   :  { %v2202_v17 = vpop.eup %2201 }
 0x8c1   :  { %v1596_v19 = vadd.f32 1.0, %v2202_v17  ;;  %v2204_v56 = vpop.eup %2203 }
 0x8c2   :  { %v1606_v37 = vadd.f32 1.0, %v2204_v56 }
 0x8c3   :  { %2205 = vrcp.f32 %v1596_v19 }
 0x8c4   :  { %2207 = vrcp.f32 %v1606_v37 }
 0x8d0   :  { %v2206_v25 = vpop.eup %2205 }
 0x8d1   :  { %v1612_v29 = vmul.f32 %v2206_v25, %v1610_v22  ;;  %v2208_v30 = vpop.eup %2207 }
 0x8d2   :  { %v1615_v38 = vsub.f32 1.0, %v2208_v30  ;;  %v1620_v34 = vmul.f32 %v2208_v30, %v1618_v31 }
 0x8d3   :  { %v1613_v23 = vadd.f32 %v1612_v29, %v2412_v53 }
 0x8d5   :  { %2209 = vtanh.f32 %v1613_v23 }
 0x8e2   :  { %v2210_v33 = vpop.eup %2209 }
 0x8e3   :  { %v1616_v27 = vmul.f32 %v2210_v33, %v1615_v38 }
 0x8e5   :  { %v1621_v35 = vadd.f32 %v1620_v34, %v1616_v27 }
 0x8e7   :  { %v1631_v44 = vsel %vm1627_vm5, %v1630_v62, %v1621_v35  ;;  %1623 = vst.msk [vmem:[#allocation5 - $0x6] sm:$0xc0] %vm1622_vm6, %v1621_v35 }
 0x8e8   :  { %v1632_v9 = vpack.c.bf16 %v1631_v44, %v2538_v51 }
 0x8ea   :  { %2105 = vmatmul.mubr.msk.bf16.vlgmr.msra.gmra.mxu0 %vm169_vm3, %v1632_v9 }
 0x8eb   :  { %2242 = shalt.err (!%p2239_p9)
}
 0x8ec   :  { %1711 = dma.vmem_to_hbm [thread:$0]  %s1709_s30, 32, %s2680_s7, [#allocation4]   ;;  %v1785_v53 = vld [vmem:[%s2678_s5 + $0x7] ss:$0 sm:$0xff]  ;;  %vm1697_vm7 = vcmask 64512  }
 0x9aa   :  { %v1690_v51 = vpop.f32.mrf.mxu0 }
 0x9ab   :  { %v1691_v36 = vadd.f32 %v1785_v53, %v1690_v51 }
 0x9ac   :  { %v2106_v39 = vpop.f32.mrf.mxu0 }
 0x9ad   :  { %1698 = vst.msk [vmem:[%s2679_s6] sm:$0xff] %vm1697_vm7, %v1691_v36 }
 0x9ae   :  { %v1693_v40 = vpop.f32.mrf.mxu0 }
 0x9af   :  { %v1694_v42 = vadd.f32 %v1785_v53, %v1693_v40 }
 0x9b0   :  { %v2107_v43 = vpop.f32.mrf.mxu0 }
 0x9b1   :  { %1699 = vst.msk [vmem:[%s2679_s6 + $0x8] sm:$0xff] %vm1697_vm7, %v1694_v42 }
 0x9b2   :  { %2253 = dma.done.wait [#allocation4], 32  }
 0x9b3   :  { %2254 = vsyncadd [#allocation4], 4294967264 }
 0x9b4   :  { %1717 = vsyncpa [#allocation3], 1 }
 0x9b5   :  { %1718 = vsyncpa [#allocation4], 1 }

</bundles_post_ra>
